<compile_context>
chip_gen: v7x
topology: tpu7x:2x2x1
jax: 0.10.0
libtpu: 0.0.40
codegen_flags: <defaults>
</compile_context>

<pallas_src>
import math
import functools

import jax
import jax.numpy as jnp
import numpy as np
from jax import lax
from jax.experimental import pallas as pl
from jax.experimental.pallas import tpu as pltpu


_NV = 8            # packed value width: [vx, vy, 1, 0, 0, 0, 0, 0]
_NEG_BIG = -1e30   # additive score bias for padded keys (finite -> no inf-inf NaN)


def _round_up(x, m):
    return ((x + m - 1) // m) * m


def _pick_tile(extent, candidates):
    """Largest candidate dividing `extent` (extent is always a multiple of 128)."""
    for c in candidates:
        if extent % c == 0:
            return c
    return extent


def _is_v5():
    try:
        return "v5" in jax.devices()[0].device_kind.lower()
    except Exception:
        return False


def _vmem_limit_bytes():
    """Generation-aware VMEM limit: ~half of per-core VMEM (32 MiB on v7x,
    64 MiB on v5e/v6e). Per-step working set here is only a few MiB."""
    cap = 64 << 20
    try:
        cap = int(getattr(pltpu.get_tpu_info(), "vmem_capacity_bytes", cap))
    except Exception:
        pass
    return int(min(max(cap // 2, 32 << 20), 64 << 20))


# --------------------------------------------------------------------------
# Shared kernel: flash-style  softmax(q @ k / sqrt(C)) @ v  with deferred
# normalization.  Used for both global_correlation_softmax (value = pixel
# coords, query coords subtracted at the end) and SelfAttnPropagation
# (value = flow, gq = zeros).
# --------------------------------------------------------------------------
def _flash_corr_kernel(q_ref, k_ref, v_ref, bias_ref, gq_ref, out_ref,
                       m_ref, acc_ref, *, scale):
    """Grid = (B, HWp//tq, HWp//tk), kv axis innermost ("arbitrary").

    q_ref:    [1, tq, Cp]  query tokens (compute dtype; bf16 in production)
    k_ref:    [1, Cp, tk]  key tokens, channels-major (no in-kernel transpose)
    v_ref:    [1, tk, NV]  packed value [vx, vy, 1, 0...]  (f32)
    bias_ref: [1, tk]      0 for valid keys, -1e30 for padded keys (f32)
    gq_ref:   [2, tq]      subtracted from the normalized result (coords / zeros)
    out_ref:  [1, 2, tq]   lane-dense output
    m_ref:    [tq, 1]      running max (f32 scratch)
    acc_ref:  [tq, NV]     running rescaled numerators + denominator (f32 scratch)
    """
    ki = pl.program_id(2)

    @pl.when(ki == 0)
    def _():
        m_ref[...] = jnp.full(m_ref.shape, -jnp.inf, m_ref.dtype)
        acc_ref[...] = jnp.zeros(acc_ref.shape, acc_ref.dtype)

    # Fold 1/sqrt(C) into the small [tq, Cp] operand, not the tq x tk scores.
    q = q_ref[0] * scale                                     # [tq, Cp]
    k = k_ref[0]                                             # [Cp, tk]
    s = lax.dot_general(q, k, (((1,), (0,)), ((), ())),
                        preferred_element_type=jnp.float32)  # [tq, tk] f32
    s = s + bias_ref[...]                                    # mask padded keys

    m_prev = m_ref[...]
    m_new = jnp.maximum(m_prev, jnp.max(s, axis=-1, keepdims=True))
    alpha = jnp.exp(m_prev - m_new)                          # [tq, 1]
    p = jnp.exp(s - m_new)                                   # [tq, tk] f32

    # One MXU pass produces the value numerators AND the softmax denominator
    # (the ones column packed into v).
    acc_ref[...] = acc_ref[...] * alpha + jnp.dot(
        p, v_ref[0], preferred_element_type=jnp.float32)
    m_ref[...] = m_new

    @pl.when(ki == pl.num_programs(2) - 1)
    def _():
        acc = acc_ref[...]                                   # [tq, NV] (only 8 cols)
        # Deferred normalization: tq reciprocals, once per q tile (exact keeps
        # the demo numerics tight; approx=True is fine in production).
        inv = pl.reciprocal(acc[:, 2:3], approx=False)       # [tq, 1]
        res_t = jnp.transpose(acc * inv)                     # [NV, tq] lane-dense
        out_ref[0] = (res_t[0:2, :] - gq_ref[...]).astype(out_ref.dtype)


def _flash_attention_value(q_tok, k_cm, v, key_bias, query_xy, *, scale):
    """softmax(q @ k * scale) @ v  (first two value columns) minus query_xy.

    q_tok:    [B, HWp, Cp]  compute dtype
    k_cm:     [B, Cp, HWp]  compute dtype (channels-major)
    v:        [1 or B, HWp, NV] f32 packed value
    key_bias: [1, HWp] f32 (0 valid / -1e30 padded)
    query_xy: [2, HWp] f32 (coords to subtract, or zeros)
    returns:  [B, 2, HWp] f32
    """
    B, HWp, Cp = q_tok.shape

    # v5-class chips: keep tq at 128 (4x128^2 MXU, avoid extra vreg pressure on
    # the [tq, tk] exp/rescale temporaries).  Sweep per generation for best perf.
    tq = _pick_tile(HWp, (128,) if _is_v5() else (256, 128))
    tk = _pick_tile(HWp, (1024, 512, 256, 128))

    if v.shape[0] == B:
        v_map = lambda b, q, k: (b, k, 0)
    else:  # batch-invariant value (kernel 1: pixel coordinates)
        v_map = lambda b, q, k: (0, k, 0)

    kernel = functools.partial(_flash_corr_kernel, scale=scale)
    return pl.pallas_call(
        kernel,
        out_shape=jax.ShapeDtypeStruct((B, 2, HWp), jnp.float32),
        grid_spec=pltpu.PrefetchScalarGridSpec(
            num_scalar_prefetch=0,
            grid=(B, HWp // tq, HWp // tk),
            in_specs=[
                pl.BlockSpec((1, tq, Cp), lambda b, q, k: (b, q, 0)),   # queries
                pl.BlockSpec((1, Cp, tk), lambda b, q, k: (b, 0, k)),   # keys (C-major)
                pl.BlockSpec((1, tk, _NV), v_map),                      # packed value
                pl.BlockSpec((1, tk), lambda b, q, k: (0, k)),          # key pad bias
                pl.BlockSpec((2, tq), lambda b, q, k: (0, q)),          # query coords
            ],
            out_specs=pl.BlockSpec((1, 2, tq), lambda b, q, k: (b, 0, q)),
            scratch_shapes=[
                pltpu.VMEM((tq, 1), jnp.float32),     # running max
                pltpu.VMEM((tq, _NV), jnp.float32),   # accumulator (8 live cols)
            ],
        ),
        compiler_params=pltpu.CompilerParams(
            # No cross-q-tile state left in the kernel, so both B and the
            # q-tile axis can shard across TensorCores (v7x megacore).
            dimension_semantics=("parallel", "parallel", "arbitrary"),
            vmem_limit_bytes=_vmem_limit_bytes(),
        ),
    )(q_tok, k_cm, v, key_bias, query_xy)


# --------------------------------------------------------------------------
# TextureNet module (JAX/Pallas)
# --------------------------------------------------------------------------
def _coords_grid_flat(h, w):
    ys, xs = jnp.meshgrid(jnp.arange(h), jnp.arange(w), indexing="ij")
    # channel order (x, y) matches GMFlow coords_grid
    return jnp.stack([xs, ys], axis=-1).reshape(h * w, 2).astype(jnp.float32)


class TextureNetPallas:
    def __init__(self, num_scales=2, feature_channels=128, upsample_factor=8,
                 reg_refine=False, key=None, compute_dtype=jnp.bfloat16):
        self.feature_channels = feature_channels
        self.num_scales = num_scales
        self.upsample_factor = upsample_factor
        self.reg_refine = reg_refine
        # bf16 default: ~3-4x MXU throughput on v6e/v7x for the HW^2 score
        # matmul; softmax stats / values / normalization stay f32.
        self.compute_dtype = compute_dtype

        if key is None:
            key = jax.random.PRNGKey(0)
        kq, kk, kbq, kbk = jax.random.split(key, 4)
        C = feature_channels
        # SelfAttnPropagation params: q_proj / k_proj Linear(C, C), stored as
        # [in, out] so y = x @ W + b.
        xav = math.sqrt(6.0 / (C + C))
        bnd = 1.0 / math.sqrt(C)
        self.wq = jax.random.uniform(kq, (C, C), jnp.float32, -xav, xav)
        self.wk = jax.random.uniform(kk, (C, C), jnp.float32, -xav, xav)
        self.bq = jax.random.uniform(kbq, (1, C), jnp.float32, -bnd, bnd)
        self.bk = jax.random.uniform(kbk, (1, C), jnp.float32, -bnd, bnd)

    def __call__(self, feature0, feature1, scale_idx,
                 corr_radius_list=None, prop_radius_list=None,
                 num_reg_refine=6, pred_bidir_flow=False, flow=None):
        del num_reg_refine  # reg_refine path not exercised by this forward
        flow_preds = []
        B, C, H, W = feature0.shape
        HW = H * W
        corr_radius = corr_radius_list[scale_idx]
        prop_radius = prop_radius_list[scale_idx]
        scale = 1.0 / math.sqrt(C)      # original C, independent of padding
        cdt = self.compute_dtype

        # ---- layout + padding: tokens to a multiple of 128, channels to 128 ----
        HWp = _round_up(HW, 128)
        Cp = _round_up(C, 128)

        f0_tok = jnp.transpose(feature0.reshape(B, C, HW), (0, 2, 1))   # [B, HW, C]
        f1_cm = feature1.reshape(B, C, HW)                              # [B, C, HW]
        f0_tok_p = jnp.pad(f0_tok, ((0, 0), (0, HWp - HW), (0, Cp - C))).astype(cdt)
        f1_cm_p = jnp.pad(f1_cm, ((0, 0), (0, Cp - C), (0, HWp - HW))).astype(cdt)

        coords = _coords_grid_flat(H, W)                                # [HW, 2] f32
        gq = jnp.pad(jnp.transpose(coords), ((0, 0), (0, HWp - HW)))    # [2, HWp]
        key_bias = jnp.where(jnp.arange(HWp) < HW, 0.0,
                             _NEG_BIG).astype(jnp.float32)[None, :]     # [1, HWp]

        if corr_radius == -1:
            if pred_bidir_flow:
                # TODO(synk): pred_bidir_flow not implemented.
                raise NotImplementedError("pred_bidir_flow not implemented")
            # Packed value [x, y, 1, 0...] shared across batch (f32: exact coords).
            v1 = jnp.concatenate([coords, jnp.ones((HW, 1), jnp.float32)], axis=-1)
            v1 = jnp.pad(v1, ((0, HWp - HW), (0, _NV - 3)))[None]       # [1, HWp, NV]
            flow_pred_2hw = _flash_attention_value(
                f0_tok_p, f1_cm_p, v1, key_bias, gq, scale=scale)[:, :, :HW]
        else:
            # TODO(synk): local_correlation_softmax (corr_radius != -1) not implemented.
            raise NotImplementedError("local_correlation_softmax not implemented")

        # [B, 2, HW] -> [B, 2, H, W] is a free reshape (lane-dense layout).
        flow_pred = flow_pred_2hw.reshape(B, 2, H, W)

        if flow is not None:
            flow = flow + flow_pred
            flow_preds.append(flow)
            return flow, flow_preds

        flow_preds.append(flow_pred)
        if prop_radius > 0:
            # TODO(synk): local-window self-attention propagation not implemented.
            raise NotImplementedError("local window attention not implemented")

        # SelfAttnPropagation: query = q_proj(x), key = k_proj(query), value = flow.
        # Projections precomputed as plain XLA matmuls (O(HW*C^2), negligible vs
        # the HW^2*C attention) so the kernel needs no per-batch key cache in VMEM
        # and keys arrive channels-major like kernel 1's feature1.
        q = f0_tok @ self.wq + self.bq                                   # [B, HW, C]
        k = q @ self.wk + self.bk                                        # [B, HW, C]
        q_p = jnp.pad(q, ((0, 0), (0, HWp - HW), (0, Cp - C))).astype(cdt)
        k_cm_p = jnp.pad(jnp.transpose(k, (0, 2, 1)),
                         ((0, 0), (0, Cp - C), (0, HWp - HW))).astype(cdt)

        # Packed value: [flow_x, flow_y, 1, 0...] per token (kept f32).
        flow_tok = jnp.transpose(flow_pred_2hw, (0, 2, 1))               # [B, HW, 2]
        v2 = jnp.concatenate(
            [flow_tok, jnp.ones((B, HW, 1), jnp.float32)], axis=-1)
        v2 = jnp.pad(v2, ((0, 0), (0, HWp - HW), (0, _NV - 3)))          # [B, HWp, NV]

        zeros_xy = jnp.zeros((2, HWp), jnp.float32)                      # no coord subtract
        attn_2hw = _flash_attention_value(
            q_p, k_cm_p, v2, key_bias, zeros_xy, scale=scale)[:, :, :HW]
        flow = attn_2hw.reshape(B, 2, H, W)
        flow_preds.append(flow)
        return flow, flow_preds


# --------------------------------------------------------------------------
# Pure-JAX reference (for correctness check only)
# --------------------------------------------------------------------------
def _reference_forward(net, feature0, feature1):
    B, C, H, W = feature0.shape
    f0 = jnp.transpose(feature0.reshape(B, C, H * W), (0, 2, 1))
    f1 = jnp.transpose(feature1.reshape(B, C, H * W), (0, 2, 1))
    grid = _coords_grid_flat(H, W)

    corr = jnp.einsum("bpc,bqc->bpq", f0, f1) / math.sqrt(C)
    prob = jax.nn.softmax(corr, axis=-1)
    flow_pred = jnp.einsum("bpq,qd->bpd", prob, grid) - grid[None]

    q = f0 @ net.wq + net.bq
    k = q @ net.wk + net.bk          # GMFlow: key = k_proj(q_proj(x))
    scores = jnp.einsum("bpc,bqc->bpq", q, k) / math.sqrt(C)
    attn = jax.nn.softmax(scores, axis=-1)
    flow = jnp.einsum("bpq,bqd->bpd", attn, flow_pred)

    to_nchw = lambda x: jnp.transpose(x.reshape(B, H, W, 2), (0, 3, 1, 2))
    return to_nchw(flow), to_nchw(flow_pred)


# --------------------------------------------------------------------------
if __name__ == "__main__":
    B, C, H, W = 2, 32, 8, 8   # small demo shapes; feature_channels = 32

    key = jax.random.PRNGKey(0)
    k0, k1, kparam = jax.random.split(key, 3)
    feature0 = jax.random.normal(k0, (B, C, H, W), jnp.float32)
    feature1 = jax.random.normal(k1, (B, C, H, W), jnp.float32)

    # Production path: bf16 score matmuls (default), f32 softmax stats/values.
    net = TextureNetPallas(num_scales=2, feature_channels=C,
                           upsample_factor=8, key=kparam)
    flow, flow_preds = net(feature0, feature1, scale_idx=0,
                           corr_radius_list=[-1, 4],
                           prop_radius_list=[-1, 1])
    jax.block_until_ready(flow)
    jax.block_until_ready(flow_preds)
    assert flow.shape == (B, 2, H, W)
    assert len(flow_preds) == 2 and flow_preds[0].shape == (B, 2, H, W)

    # Tight numerics check on the f32 compute path (same params, same kernels).
    net_f32 = TextureNetPallas(num_scales=2, feature_channels=C,
                               upsample_factor=8, key=kparam,
                               compute_dtype=jnp.float32)
    flow32, preds32 = net_f32(feature0, feature1, scale_idx=0,
                              corr_radius_list=[-1, 4],
                              prop_radius_list=[-1, 1])
    jax.block_until_ready(flow32)

    ref_flow, ref_flow_pred = _reference_forward(net_f32, feature0, feature1)
    np.testing.assert_allclose(np.asarray(preds32[0]), np.asarray(ref_flow_pred),
                               rtol=1e-3, atol=1e-3)
    np.testing.assert_allclose(np.asarray(flow32), np.asarray(ref_flow),
                               rtol=1e-3, atol=1e-3)

    # Loose sanity on the bf16 production path (only bf16 score rounding differs).
    flow_np = np.asarray(flow)
    assert np.all(np.isfinite(flow_np))
    assert float(np.max(np.abs(flow_np - np.asarray(ref_flow)))) < 1.0

    print("KERNEL_OK")
</pallas_src>

<mosaic_0001>
module attributes {stable_mosaic.version = 11 : i64} {
  func.func @_flash_corr_kernel(%arg0: i32, %arg1: i32, %arg2: i32, %arg3: memref<1x128x128xbf16, #tpu.memory_space<vmem>>, %arg4: memref<1x128x128xbf16, #tpu.memory_space<vmem>>, %arg5: memref<1x128x8xf32, #tpu.memory_space<vmem>>, %arg6: memref<1x128xf32, #tpu.memory_space<vmem>>, %arg7: memref<2x128xf32, #tpu.memory_space<vmem>>, %arg8: memref<1x2x128xf32, #tpu.memory_space<vmem>>, %arg9: memref<128x1xf32, #tpu.memory_space<vmem>>, %arg10: memref<128x8xf32, #tpu.memory_space<vmem>>) attributes {dimension_semantics = [#tpu.dimension_semantics<parallel>, #tpu.dimension_semantics<parallel>, #tpu.dimension_semantics<arbitrary>], iteration_bounds = array<i64: 2, 1, 1>, scalar_prefetch = 0 : i64, scratch_operands = 2 : i64, tpu.core_type = #tpu.core_type<tc>, window_params = [{transform_indices = @transform_0, window_bounds = array<i64: 1, 128, 128>}, {transform_indices = @transform_1, window_bounds = array<i64: 1, 128, 128>}, {transform_indices = @transform_2, window_bounds = array<i64: 1, 128, 8>}, {transform_indices = @transform_3, window_bounds = array<i64: 1, 128>}, {transform_indices = @transform_4, window_bounds = array<i64: 2, 128>}, {transform_indices = @transform_5, window_bounds = array<i64: 1, 2, 128>}]} {
    %c0_i32 = arith.constant 0 : i32
    %0 = arith.cmpi eq, %arg2, %c0_i32 : i32
    %1 = arith.extui %0 : i1 to i32
    %c0_i32_0 = arith.constant 0 : i32
    %2 = arith.cmpi ne, %1, %c0_i32_0 : i32
    scf.if %2 {
      %cst_24 = arith.constant 0xFF800000 : f32
      %34 = vector.broadcast %cst_24 : f32 to vector<128x1xf32>
      %c0_25 = arith.constant 0 : index
      %c0_26 = arith.constant 0 : index
      %35 = vector.load %arg9[%c0_25, %c0_26] : memref<128x1xf32, #tpu.memory_space<vmem>>, vector<128x1xf32>
      tpu.vector_store %arg9[%c0_25, %c0_26], %34 {strides = array<i32>} : memref<128x1xf32, #tpu.memory_space<vmem>>, vector<128x1xf32>,
      %cst_27 = arith.constant 0.000000e+00 : f32
      %36 = vector.broadcast %cst_27 : f32 to vector<128x8xf32>
      %c0_28 = arith.constant 0 : index
      %c0_29 = arith.constant 0 : index
      %37 = vector.load %arg10[%c0_28, %c0_29] : memref<128x8xf32, #tpu.memory_space<vmem>>, vector<128x8xf32>
      tpu.vector_store %arg10[%c0_28, %c0_29], %36 {strides = array<i32>} : memref<128x8xf32, #tpu.memory_space<vmem>>, vector<128x8xf32>,
    } else {
    }
    %c0 = arith.constant 0 : index
    %c0_1 = arith.constant 0 : index
    %c0_2 = arith.constant 0 : index
    %3 = vector.load %arg3[%c0, %c0_1, %c0_2] : memref<1x128x128xbf16, #tpu.memory_space<vmem>>, vector<1x128x128xbf16>
    %4 = vector.shape_cast %3 : vector<1x128x128xbf16> to vector<128x128xbf16>
    %cst = arith.constant 1.767580e-01 : bf16
    %5 = vector.broadcast %cst : bf16 to vector<128x128xbf16>
    %6 = arith.mulf %4, %5 : vector<128x128xbf16>
    %c0_3 = arith.constant 0 : index
    %c0_4 = arith.constant 0 : index
    %c0_5 = arith.constant 0 : index
    %7 = vector.load %arg4[%c0_3, %c0_4, %c0_5] : memref<1x128x128xbf16, #tpu.memory_space<vmem>>, vector<1x128x128xbf16>
    %8 = vector.shape_cast %7 : vector<1x128x128xbf16> to vector<128x128xbf16>
    %cst_6 = arith.constant dense<0.000000e+00> : vector<128x128xf32>
    %9 = tpu.matmul %6, %8, %cst_6 {dimension_numbers = #tpu.dot_dimension_numbers<[1], [0], [0], [1], [0, 0, 1, 1], [], []>} : vector<128x128xbf16>, vector<128x128xbf16>, vector<128x128xf32> -> vector<128x128xf32>
    %c0_7 = arith.constant 0 : index
    %c0_8 = arith.constant 0 : index
    %10 = vector.load %arg6[%c0_7, %c0_8] : memref<1x128xf32, #tpu.memory_space<vmem>>, vector<1x128xf32>
    %11 = vector.broadcast %10 : vector<1x128xf32> to vector<128x128xf32>
    %12 = arith.addf %9, %11 : vector<128x128xf32>
    %c0_9 = arith.constant 0 : index
    %c0_10 = arith.constant 0 : index
    %13 = vector.load %arg9[%c0_9, %c0_10] : memref<128x1xf32, #tpu.memory_space<vmem>>, vector<128x1xf32>
    %cst_11 = arith.constant dense<0xFF800000> : vector<128xf32>
    %14 = vector.multi_reduction <maximumf>, %12, %cst_11 [1] : vector<128x128xf32> to vector<128xf32>
    %15 = vector.shape_cast %14 : vector<128xf32> to vector<128x1xf32>
    %16 = arith.maximumf %13, %15 : vector<128x1xf32>
    %17 = arith.subf %13, %16 : vector<128x1xf32>
    %18 = math.exp %17 : vector<128x1xf32>
    %19 = vector.broadcast %16 : vector<128x1xf32> to vector<128x128xf32>
    %20 = arith.subf %12, %19 : vector<128x128xf32>
    %21 = math.exp %20 : vector<128x128xf32>
    %c0_12 = arith.constant 0 : index
    %c0_13 = arith.constant 0 : index
    %22 = vector.load %arg10[%c0_12, %c0_13] : memref<128x8xf32, #tpu.memory_space<vmem>>, vector<128x8xf32>
    %23 = vector.broadcast %18 : vector<128x1xf32> to vector<128x8xf32>
    %24 = arith.mulf %22, %23 : vector<128x8xf32>
    %c0_14 = arith.constant 0 : index
    %c0_15 = arith.constant 0 : index
    %c0_16 = arith.constant 0 : index
    %25 = vector.load %arg5[%c0_14, %c0_15, %c0_16] : memref<1x128x8xf32, #tpu.memory_space<vmem>>, vector<1x128x8xf32>
    %26 = vector.shape_cast %25 : vector<1x128x8xf32> to vector<128x8xf32>
    %cst_17 = arith.constant dense<0.000000e+00> : vector<128x8xf32>
    %27 = tpu.matmul %21, %26, %cst_17 {dimension_numbers = #tpu.dot_dimension_numbers<[1], [0], [0], [1], [0, 0, 1, 1], [], []>} : vector<128x128xf32>, vector<128x8xf32>, vector<128x8xf32> -> vector<128x8xf32>
    %28 = arith.addf %24, %27 : vector<128x8xf32>
    %c0_18 = arith.constant 0 : index
    %c0_19 = arith.constant 0 : index
    %29 = vector.load %arg10[%c0_18, %c0_19] : memref<128x8xf32, #tpu.memory_space<vmem>>, vector<128x8xf32>
    tpu.vector_store %arg10[%c0_18, %c0_19], %28 {strides = array<i32>} : memref<128x8xf32, #tpu.memory_space<vmem>>, vector<128x8xf32>,
    %c0_20 = arith.constant 0 : index
    %c0_21 = arith.constant 0 : index
    %30 = vector.load %arg9[%c0_20, %c0_21] : memref<128x1xf32, #tpu.memory_space<vmem>>, vector<128x1xf32>
    tpu.vector_store %arg9[%c0_20, %c0_21], %16 {strides = array<i32>} : memref<128x1xf32, #tpu.memory_space<vmem>>, vector<128x1xf32>,
    %c0_i32_22 = arith.constant 0 : i32
    %31 = arith.cmpi eq, %arg2, %c0_i32_22 : i32
    %32 = arith.extui %31 : i1 to i32
    %c0_i32_23 = arith.constant 0 : i32
    %33 = arith.cmpi ne, %32, %c0_i32_23 : i32
    scf.if %33 {
      %c0_24 = arith.constant 0 : index
      %c0_25 = arith.constant 0 : index
      %34 = vector.load %arg10[%c0_24, %c0_25] : memref<128x8xf32, #tpu.memory_space<vmem>>, vector<128x8xf32>
      %35 = vector.extract_strided_slice %34 {offsets = [0, 2], sizes = [128, 1], strides = [1, 1]} : vector<128x8xf32> to vector<128x1xf32>
      %36 = tpu.reciprocal %35 : vector<128x1xf32> -> vector<128x1xf32>
      %37 = vector.broadcast %36 : vector<128x1xf32> to vector<128x8xf32>
      %38 = arith.mulf %34, %37 : vector<128x8xf32>
      %39 = tpu.transpose %38, [1, 0] : vector<128x8xf32> -> vector<8x128xf32>
      %40 = vector.extract_strided_slice %39 {offsets = [0, 0], sizes = [2, 128], strides = [1, 1]} : vector<8x128xf32> to vector<2x128xf32>
      %c0_26 = arith.constant 0 : index
      %c0_27 = arith.constant 0 : index
      %41 = vector.load %arg7[%c0_26, %c0_27] : memref<2x128xf32, #tpu.memory_space<vmem>>, vector<2x128xf32>
      %42 = arith.subf %40, %41 : vector<2x128xf32>
      %c0_28 = arith.constant 0 : index
      %c0_29 = arith.constant 0 : index
      %c0_30 = arith.constant 0 : index
      %43 = vector.load %arg8[%c0_28, %c0_29, %c0_30] : memref<1x2x128xf32, #tpu.memory_space<vmem>>, vector<1x2x128xf32>
      %44 = vector.shape_cast %43 : vector<1x2x128xf32> to vector<2x128xf32>
      %45 = vector.shape_cast %42 : vector<2x128xf32> to vector<1x2x128xf32>
      tpu.vector_store %arg8[%c0_28, %c0_29, %c0_30], %45 {strides = array<i32>} : memref<1x2x128xf32, #tpu.memory_space<vmem>>, vector<1x2x128xf32>,
    } else {
    }
    return
  }
  func.func @transform_0(%arg0: i32, %arg1: i32, %arg2: i32) -> (i32, i32, i32) {
    %c0_i32 = arith.constant 0 : i32
    %c0_i32_0 = arith.constant 0 : i32
    return %arg0, %arg1, %c0_i32 : i32, i32, i32
  }
  func.func @transform_1(%arg0: i32, %arg1: i32, %arg2: i32) -> (i32, i32, i32) {
    %c0_i32 = arith.constant 0 : i32
    %c0_i32_0 = arith.constant 0 : i32
    return %arg0, %c0_i32, %arg2 : i32, i32, i32
  }
  func.func @transform_2(%arg0: i32, %arg1: i32, %arg2: i32) -> (i32, i32, i32) {
    %c0_i32 = arith.constant 0 : i32
    %c0_i32_0 = arith.constant 0 : i32
    %c0_i32_1 = arith.constant 0 : i32
    return %c0_i32, %arg2, %c0_i32_0 : i32, i32, i32
  }
  func.func @transform_3(%arg0: i32, %arg1: i32, %arg2: i32) -> (i32, i32) {
    %c0_i32 = arith.constant 0 : i32
    %c0_i32_0 = arith.constant 0 : i32
    return %c0_i32, %arg2 : i32, i32
  }
  func.func @transform_4(%arg0: i32, %arg1: i32, %arg2: i32) -> (i32, i32) {
    %c0_i32 = arith.constant 0 : i32
    %c0_i32_0 = arith.constant 0 : i32
    return %c0_i32, %arg1 : i32, i32
  }
  func.func @transform_5(%arg0: i32, %arg1: i32, %arg2: i32) -> (i32, i32, i32) {
    %c0_i32 = arith.constant 0 : i32
    %c0_i32_0 = arith.constant 0 : i32
    return %arg0, %c0_i32, %arg1 : i32, i32, i32
  }
}

</mosaic_0001>

<bundles_post_ra>
// kernel: tpu_custom_call.1
= control target key start
LH: loop header
LB: loop body
LE: loop exit
PB: predicated region body
PF: predicated region fallthrough
CT: control target
= control target key end

     0   :  { %10 = vsyncpa [#allocation5], 0  ;;  %s2641_s0 = inlined_call_operand.vmem [shape: bf16[2,128,128], index: 0, kind: input, shape index: {}]   ;;  %s2642_s1 = inlined_call_operand.hbm [shape: bf16[2,128,128], index: 1, kind: input, shape index: {}]   ;;  %s2643_s2 = inlined_call_operand.vmem [shape: f32[1,128,8], index: 2, kind: input, shape index: {}]   ;;  %s2644_s3 = inlined_call_operand.vmem [shape: f32[1,128], index: 3, kind: input, shape index: {}]   ;;  %s2645_s4 = inlined_call_operand.vmem [shape: f32[2,128], index: 4, kind: input, shape index: {}]   ;;  %s2646_s5 = inlined_call_operand.hbm [shape: f32[2,2,128], index: 5, kind: output, shape index: {}]  }
   0x1   :  { %12 = vsyncpa [#allocation5 + $0x1], 0 }
   0x2   :  { %13 = vsyncpa [#allocation6], 0 }
   0x3   :  { %15 = vsyncpa [#allocation6 + $0x1], 0  ;;  %s2066_s18 = smov 0   ;;  %s2068_s19 = smov 0  }
   0x4   :  { %s2070_s20 = smov 0   ;;  %s2072_s21 = smov 0  }
   0x5   :  { %s2074_s22 = smov 0   ;;  %s2076_s23 = smov 0  }
   0x6 LB: > { %s1532_s24 = sadd.s32 4294967295, %s2026_s23   ;;  %s1533_s25 = sadd.s32 4294967294, %s2026_s23   ;;  %s2026_s23 = sphi %s2076_s23, %s21_s23   ;;  %s2022_s22 = sphi %s2074_s22, %s2661_s22   ;;  %s2018_s21 = sphi %s2072_s21, %s2660_s21   ;;  %s2014_s20 = sphi %s2070_s20, %s2659_s20   ;;  %s2010_s19 = sphi %s2068_s19, %s2658_s19   ;;  %s2006_s18 = sphi %s2066_s18, %s2657_s18  }
   0x7   : > { %s40_s26 = sadd.s32 1, %s2022_s22  ;;  %s77_s27 = sadd.s32 1, %s2014_s20 }
   0x8   : > { %p42_p0 = scmp.ge.s32.totalorder %s40_s26, 2  ;;  %p84_p1 = scmp.ne.s32.totalorder %s2014_s20, %s2010_s19 }
   0x9   : > { %p85_p2 = scmp.eq.s32.totalorder %s2026_s23, 0  ;;  %p90_p3 = scmp.ne.s32.totalorder %s2010_s19, %s2006_s18 }
   0xa   : > { %s2663_s26 = smov (%p42_p0, %s40_s26), 0  ;;  %p91_p5 = scmp.eq.s32.totalorder %s1532_s24, 0 }
   0xb   : > { %p2107_p4 = por %p85_p2, %p84_p1  ;;  %s72_s29 = ssub.s32 %s2022_s22, %s2663_s26 }
   0xc   : > { %p194_p6 = scmp.eq.s32.totalorder %s1532_s24, 1  ;;  %p75_p7 = scmp.eq.s32.totalorder %s72_s29, 0 }
   0xd   : > { %p2113_p8 = por %p91_p5, %p90_p3  ;;  %p200_p10 = scmp.eq.s32.totalorder %s1533_s25, 1 }
   0xe   : > { %p2117_p9 = por %p194_p6, %p84_p1  ;;  %p1750_p13 = scmp.lt.s32.totalorder %s2026_s23, 2 }
   0xf   : > { %s2122_s7 = scalar_select %p75_p7, %s2014_s20, %s77_s27  }
  0x10   : > { %s2650_s6 = scalar_select %p2117_p9, 1, 0 }
  0x11   : > { %p2124_p11 = por %p200_p10, %p90_p3  ;;  %s255_s9 = sand.u32 1, %s2014_s20  }
  0x12   : > { %s1539_s10 = sshll.u32 %s255_s9, 6  ;;  %s1568_s11 = sshll.u32 %s2022_s22, 10 }
  0x13   : > { %s2651_s8 = scalar_select %p2124_p11, 1, 0 }
  0x14   : > { %s2135_s14 = scalar_lea.hbm %s2642_s1, %s1568_s11  ;;  %s259_s15 = scalar_lea.vmem [#allocation4], %s1539_s10 }
  0x15   : > { %s267_s16 = sshll.u32 %s259_s15, 4  ;;  %p2141_p0 = pnand %p1750_p13, %p2107_p4  ;;  %s2137_s16 = int_to_ptr.vmem [resolvable:$true] %s267_s16 }
  0x16   : > { %s2146_s24 = scalar_lea.sflag [#allocation5], %s255_s9  ;;  %s1914_s25 = scalar_lea.hbm %s2135_s14, 1024 }
  0x17   : > { %p1915_p2 = scmp.ne.s32.totalorder %s2135_s14, %s1914_s25  ;;  %p1916_p3 = pneg %p2141_p0 }
  0x18   : > { %s1919_s28 = scalar_lea.hbm %s2642_s1, 2048  ;;  %p1920_p4 = scmp.lt.u32.totalorder %s2135_s14, %s2642_s1 }
  0x19   : > { %p1917_p5 = pnand %p1916_p3, %p1915_p2  ;;  %p1921_p7 = scmp.lt.u32.totalorder %s1919_s28, %s1914_s25 }
  0x1a   : > { %p1923_p13 = scmp.lt.u32.totalorder %s1914_s25, %s2135_s14 }
  0x1b   : > { %p1918_p6 = pneg %p1917_p5  ;;  %p1922_p10 = por %p1921_p7, %p1920_p4 }
  0x1d   : > { %p1924_p12 = por %p1923_p13, %p1922_p10 }
  0x1f   : > { %p1925_p1 = pnand %p1924_p12, %p1918_p6 }
  0x21   : > { %1928 = shalt.err (!%p1925_p1)
}
  0x22   : > { %s1929_s9 = scalar_lea.vmem %s2137_s16, 1024  ;;  %s2028_s12 = smov [#allocation4]  }
  0x23   : > { %p1930_p2 = scmp.ne.s32.totalorder %s2137_s16, %s1929_s9  ;;  %s1934_s13 = sshll.u32 %s2028_s12, 4  ;;  %s1935_s13 = int_to_ptr.vmem [resolvable:$false] %s1934_s13 }
  0x24   : > { %s1936_s15 = scalar_lea.vmem %s1935_s13, 2048  ;;  %p1937_p9 = scmp.lt.s32.totalorder %s2137_s16, %s1935_s13 }
  0x25   : > { %p1932_p5 = pnand %p1930_p2, %p1916_p3  ;;  %p1938_p4 = scmp.lt.s32.totalorder %s1936_s15, %s1929_s9 }
  0x27   : > { %p1933_p11 = pneg %p1932_p5  ;;  %p1939_p7 = por %p1938_p4, %p1937_p9 }
  0x29   : > { %p1940_p10 = pnand %p1939_p7, %p1933_p11 }
  0x2b   : > { %1943 = shalt.err (!%p1940_p10)
}
  0x2c   : > { %s2029_s25 = smov 64   ;;  %s2030_s27 = smov 4  }
  0x2d   : > { %1745 = dma.hbm_to_vmem [thread:$0]  (!%p2141_p0), %s2135_s14, 1024, %s2137_s16, %s2146_s24, %s2029_s25, %s2029_s25, %s2030_s27  }
  0x2e   : > { %p275_p12 = scmp.lt.s32.totalorder %s2026_s23, 3  ;;  %p2653_p1 = scmp.ge.s32.totalorder %s2026_s23, 1 }
  0x30   : > { %p276_p3 = pnand %p2653_p1, %p275_p12 }
  0x31   : > { %s2178_s29 = sand.u32 (!%p276_p3), 1, %s2010_s19  }
  0x32   : > { %279 = sbr.rel (%p276_p3) target bundleno = 1109 (0x455), region = 40  ;;  %s1543_s28 = sshll.u32 (!%p276_p3), %s2178_s29, 6 }
  0x33   : > { %s282_s10 = scalar_lea.sflag (!%p276_p3), [#allocation5], %s2178_s29  ;;  %s2182_s11 = scalar_lea.vmem (!%p276_p3), [#allocation4], %s1543_s28 }
  0x39   : > { %1997 = dma.done.wait (%p2113_p8), %s282_s10, 1024  }
  0x3a   : > { %1999 = vsyncadd (%p2113_p8), %s282_s10, 4294966272  ;;  %p334_p9 = scmp.lt.s32.totalorder %s2018_s21, 1  ;;  %v1810_v0 = vld [vmem:[%s2182_s11] sm:$0xff]   ;;  %v1811_v1 = vld [vmem:[%s2182_s11 + $0x8] sm:$0xff]   ;;  %vm362_vm0 = vcmask 7168   ;;  %v2031_v48 = vmov -inf  }
  0x3b   : > { %1618 = vmatprep.subr.bf16.mxu0 %v1810_v0  ;;  %v1812_v2 = vld [vmem:[%s2182_s11 + $0x10] sm:$0xff]   ;;  %v1813_v3 = vld [vmem:[%s2182_s11 + $0x18] sm:$0xff]   ;;  %v1814_v9 = vld [vmem:[%s2182_s11 + $0x20] sm:$0xff]   ;;  %365 = vst.msk [vmem:[#allocation2 + $0x10] sm:$0xff] %vm362_vm0, %v2031_v48  ;;  %vm379_vm1 = vcmask 64512   ;;  %s1544_s28 = sshll.u32 %s2178_s29, 1 }
  0x3c   : > { %s335_s14 = scalar_select %p334_p9, %s2018_s21, 1  ;;  %1619 = vmatpush3.bf16.msra.mxu0 %v1810_v0  ;;  %v1815_v10 = vld [vmem:[%s2182_s11 + $0x28] sm:$0xff]   ;;  %v1816_v11 = vld [vmem:[%s2182_s11 + $0x30] sm:$0xff]   ;;  %v1817_v14 = vld [vmem:[%s2182_s11 + $0x38] sm:$0xff]   ;;  %363 = vst.msk [vmem:[#allocation2] sm:$0xff] %vm362_vm0, %v2031_v48 }
  0x3d   : > { %1620 = vmatprep.subr.bf16.mxu0 %v1811_v1  ;;  %364 = vst.msk [vmem:[#allocation2 + $0x8] sm:$0xff] %vm362_vm0, %v2031_v48  ;;  %366 = vst.msk [vmem:[#allocation2 + $0x18] sm:$0xff] %vm362_vm0, %v2031_v48  ;;  %v1547_v49 = vld [vmem:[%s2644_s3] ss:$0 sm:$0xff]  ;;  %s1374_s12 = scalar_lea.sflag [#allocation6], %s2178_s29  ;;  %p2654_p11 = scmp.ne.s32.totalorder %s2650_s6, 0 }
  0x3e   : > { %s1569_s16 = sshll.u32 %s335_s14, 6  ;;  %367 = vst.msk [vmem:[#allocation2 + $0x20] sm:$0xff] %vm362_vm0, %v2031_v48  ;;  %368 = vst.msk [vmem:[#allocation2 + $0x28] sm:$0xff] %vm362_vm0, %v2031_v48  ;;  %s1565_s14 = sshll.u32 %s2018_s21, 5 }
  0x3f   : > { %s2196_s30 = scalar_lea.vmem %s2641_s0, %s1569_s16  ;;  %369 = vst.msk [vmem:[#allocation2 + $0x30] sm:$0xff] %vm362_vm0, %v2031_v48  ;;  %370 = vst.msk [vmem:[#allocation2 + $0x38] sm:$0xff] %vm362_vm0, %v2031_v48  ;;  %s332_s16 = scalar_lea.vmem [#allocation7], %s1544_s28 }
  0x40   : > { %1621 = vmatpush3.bf16.msra.mxu0 %v1811_v1  ;;  %v396_v4 = vld [vmem:[%s2196_s30] sm:$0xf]  ;;  %v397_v5 = vld [vmem:[%s2196_s30 + $0x4] sm:$0xf]  ;;  %v398_v12 = vld [vmem:[%s2196_s30 + $0x8] sm:$0xf]  ;;  %s2592_s9 = scalar_lea.hbm %s2646_s5, %s1565_s14 }
  0x41   : > { %1622 = vmatprep.subr.bf16.mxu0 %v1812_v2  ;;  %v412_v6 = vmul.bf16 1043676725, %v396_v4  ;;  %v413_v7 = vmul.bf16 1043676725, %v397_v5  ;;  %v399_v13 = vld [vmem:[%s2196_s30 + $0xc] sm:$0xf] }
  0x42   : > { %v400_v15 = vld [vmem:[%s2196_s30 + $0x10] sm:$0xf]  ;;  %v401_v16 = vld [vmem:[%s2196_s30 + $0x14] sm:$0xf]  ;;  %v414_v17 = vmul.bf16 1043676725, %v398_v12 }
  0x43   : > { %v1548_v8 = vcombine.low %v412_v6, %v413_v7  ;;  %v415_v18 = vmul.bf16 1043676725, %v399_v13  ;;  %v416_v19 = vmul.bf16 1043676725, %v400_v15  ;;  %v417_v20 = vmul.bf16 1043676725, %v401_v16 }
  0x44   : > { %1623 = vmatpush3.bf16.msra.mxu0 %v1812_v2  ;;  %v402_v23 = vld [vmem:[%s2196_s30 + $0x18] sm:$0xf]  ;;  %v403_v24 = vld [vmem:[%s2196_s30 + $0x1c] sm:$0xf]  ;;  %v404_v25 = vld [vmem:[%s2196_s30 + $0x20] sm:$0xf] }
  0x45   : > { %1624 = vmatprep.subr.bf16.mxu0 %v1813_v3  ;;  %1634 = vmatprep.mubr.bf16.mxu0 %v1548_v8  ;;  %v1549_v21 = vcombine.low %v414_v17, %v415_v18  ;;  %v1550_v22 = vcombine.low %v416_v19, %v417_v20  ;;  %v405_v26 = vld [vmem:[%s2196_s30 + $0x24] sm:$0xf]  ;;  %v418_v27 = vmul.bf16 1043676725, %v402_v23  ;;  %v419_v28 = vmul.bf16 1043676725, %v403_v24 }
  0x46   : > { %v420_v29 = vmul.bf16 1043676725, %v404_v25  ;;  %v421_v30 = vmul.bf16 1043676725, %v405_v26  ;;  %v406_v33 = vld [vmem:[%s2196_s30 + $0x28] sm:$0xf] }
  0x47   : > { %v1551_v31 = vcombine.low %v418_v27, %v419_v28  ;;  %v407_v34 = vld [vmem:[%s2196_s30 + $0x2c] sm:$0xf]  ;;  %v408_v35 = vld [vmem:[%s2196_s30 + $0x30] sm:$0xf]  ;;  %v409_v36 = vld [vmem:[%s2196_s30 + $0x34] sm:$0xf] }
  0x48   : > { %1625 = vmatpush3.bf16.msra.mxu0 %v1813_v3  ;;  %v1552_v32 = vcombine.low %v420_v29, %v421_v30  ;;  %v422_v37 = vmul.bf16 1043676725, %v406_v33  ;;  %v423_v38 = vmul.bf16 1043676725, %v407_v34  ;;  %v424_v39 = vmul.bf16 1043676725, %v408_v35 }
  0x49   : > { %1626 = vmatprep.subr.bf16.mxu0 %v1814_v9  ;;  %v425_v40 = vmul.bf16 1043676725, %v409_v36  ;;  %v410_v43 = vld [vmem:[%s2196_s30 + $0x38] sm:$0xf]  ;;  %v411_v44 = vld [vmem:[%s2196_s30 + $0x3c] sm:$0xf] }
  0x4a   : > { %v1553_v41 = vcombine.low %v422_v37, %v423_v38  ;;  %v426_v45 = vmul.bf16 1043676725, %v410_v43  ;;  %v427_v46 = vmul.bf16 1043676725, %v411_v44  ;;  %371 = vst.msk [vmem:[#allocation2 + $0x40] sm:$0xff] %vm362_vm0, %v2031_v48  ;;  %372 = vst.msk [vmem:[#allocation2 + $0x48] sm:$0xff] %vm362_vm0, %v2031_v48 }
  0x4b   : > { %v1554_v42 = vcombine.low %v424_v39, %v425_v40  ;;  %373 = vst.msk [vmem:[#allocation2 + $0x50] sm:$0xff] %vm362_vm0, %v2031_v48  ;;  %374 = vst.msk [vmem:[#allocation2 + $0x58] sm:$0xff] %vm362_vm0, %v2031_v48  ;;  %v2032_v6 = vmov 0   ;;  %v996_v19 = vld [vmem:[%s2643_s2] sm:$0xff]  ;;  %v997_v20 = vld [vmem:[%s2643_s2 + $0x8] sm:$0xff]  ;;  %s1388_s17 = sshll.u32 %s332_s16, 4  ;;  %s2594_s17 = int_to_ptr.vmem [resolvable:$true] %s1388_s17 }
  0x4c   : > { %1627 = vmatpush3.bf16.msra.mxu0 %v1814_v9  ;;  %v1555_v47 = vcombine.low %v426_v45, %v427_v46  ;;  %375 = vst.msk [vmem:[#allocation2 + $0x60] sm:$0xff] %vm362_vm0, %v2031_v48  ;;  %376 = vst.msk [vmem:[#allocation2 + $0x68] sm:$0xff] %vm362_vm0, %v2031_v48  ;;  %1806 = vset.pattern.permute.xlu0 %v2032_v6  ;;  %v999_v23 = vld [vmem:[%s2643_s2 + $0x18] sm:$0xff]  ;;  %v1000_v25 = vld [vmem:[%s2643_s2 + $0x20] sm:$0xff]  ;;  %s1944_s13 = scalar_lea.vmem %s2594_s17, 32  ;;  %s2035_s21 = smov [#allocation7]  }
  0x4d   : > { %1628 = vmatprep.subr.bf16.mxu0 %v1815_v10  ;;  %377 = vst.msk [vmem:[#allocation2 + $0x70] sm:$0xff] %vm362_vm0, %v2031_v48  ;;  %378 = vst.msk [vmem:[#allocation2 + $0x78] sm:$0xff] %vm362_vm0, %v2031_v48  ;;  %1807 = vset.pattern.permute.xlu1 %v2032_v6  ;;  %v1001_v26 = vld [vmem:[%s2643_s2 + $0x28] sm:$0xff]  ;;  %v2304_v28 = vld [vmem:[#allocation2 + $0x10] sm:$0xff]  ;;  %p1945_p8 = scmp.ne.s32.totalorder %s2594_s17, %s1944_s13  ;;  %s1948_s15 = sshll.u32 %s2035_s21, 4  ;;  %s1949_s15 = int_to_ptr.vmem [resolvable:$false] %s1948_s15 }
  0x4e   : > { %v1714_v27 = vpack.c.bf16 %v1001_v26, %v1000_v25  ;;  %v2306_v29 = vld [vmem:[#allocation2] sm:$0xff]  ;;  %v2314_v34 = vld [vmem:[#allocation2 + $0x18] sm:$0xff]  ;;  %v2319_v35 = vld [vmem:[#allocation2 + $0x8] sm:$0xff]  ;;  %s1950_s25 = scalar_lea.vmem %s1949_s15, 64  ;;  %p1951_p13 = scmp.lt.s32.totalorder %s2594_s17, %s1949_s15 }
  0x4f   : > { %v1002_v36 = vld [vmem:[%s2643_s2 + $0x30] sm:$0xff]  ;;  %v1003_v37 = vld [vmem:[%s2643_s2 + $0x38] sm:$0xff]  ;;  %v2337_v43 = vld [vmem:[#allocation2 + $0x20] sm:$0xff]  ;;  %p1946_p0 = pnand %p1945_p8, %p2654_p11  ;;  %p1952_p2 = scmp.lt.s32.totalorder %s1950_s25, %s1944_s13 }
  0x50   : > { %1629 = vmatpush3.bf16.msra.mxu0 %v1815_v10  ;;  %v1718_v39 = vpack.c.bf16 %v1003_v37, %v1002_v36  ;;  %v1004_v44 = vld [vmem:[%s2643_s2 + $0x40] sm:$0xff]  ;;  %v1005_v45 = vld [vmem:[%s2643_s2 + $0x48] sm:$0xff] }
  0x51   : > { %1630 = vmatprep.subr.bf16.mxu0 %v1816_v11  ;;  %v1722_v46 = vpack.c.bf16 %v1005_v45, %v1004_v44  ;;  %v2346_v48 = vld [vmem:[#allocation2 + $0x28] sm:$0xff]  ;;  %v1008_v6 = vld [vmem:[%s2643_s2 + $0x60] sm:$0xff]  ;;  %p1947_p6 = pneg %p1946_p0  ;;  %p1953_p5 = por %p1952_p2, %p1951_p13 }
  0x52   : > { %v2407_v26 = vld [vmem:[#allocation2 + $0x58] sm:$0xff] }
  0x53   : > { %p1954_p4 = pnand %p1953_p5, %p1947_p6 }
  0x54   : > { %1631 = vmatpush3.bf16.msra.mxu0 %v1816_v11 }
  0x55   : > { %1632 = vmatprep.subr.bf16.mxu0 %v1817_v14 }
  0x58   : > { %1633 = vmatpush3.bf16.msra.mxu0 %v1817_v14 }
  0x5b   : > { %1635 = vmatmul.mubr.bf16.vlgmr.msra.gmra.mrb[0].mxu0 %v1549_v21  ;;  %v998_v21 = vld [vmem:[%s2643_s2 + $0x10] sm:$0xff] }
  0x5c   : > { %1638 = vmatprep.mubr.bf16.mxu0 %v1550_v22  ;;  %v1706_v22 = vpack.c.bf16 %v997_v20, %v996_v19  ;;  %v1710_v24 = vpack.c.bf16 %v999_v23, %v998_v21  ;;  %v1010_v23 = vld [vmem:[%s2643_s2 + $0x70] sm:$0xff] }
  0x5e   : > { %1707 = vmatprep.subr.bf16.mxu1 %v1706_v22 }
  0x5f   : > { %1709 = vmatpush3.bf16.msra.mxu1 %v1706_v22  ;;  %v2393_v22 = vld [vmem:[#allocation2 + $0x50] sm:$0xff] }
  0x60   : > { %1711 = vmatprep.subr.bf16.mxu1 %v1710_v24 }
  0x63   : > { %1639 = vmatmul.mubr.bf16.gmra.mrb[4].mxu0 %v1551_v31  ;;  %1713 = vmatpush3.bf16.msra.mxu1 %v1710_v24  ;;  %v1011_v24 = vld [vmem:[%s2643_s2 + $0x78] sm:$0xff] }
  0x64   : > { %1642 = vmatprep.mubr.bf16.mxu0 %v1552_v32  ;;  %1715 = vmatprep.subr.bf16.mxu1 %v1714_v27 }
  0x67   : > { %1717 = vmatpush3.bf16.msra.mxu1 %v1714_v27 }
  0x68   : > { %1719 = vmatprep.subr.bf16.mxu1 %v1718_v39 }
  0x6b   : > { %1643 = vmatmul.mubr.bf16.gmra.mrb[8].mxu0 %v1553_v41  ;;  %1721 = vmatpush3.bf16.msra.mxu1 %v1718_v39 }
  0x6c   : > { %1646 = vmatprep.mubr.bf16.mxu0 %v1554_v42  ;;  %1723 = vmatprep.subr.bf16.mxu1 %v1722_v46 }
  0x6f   : > { %1725 = vmatpush3.bf16.msra.mxu1 %v1722_v46  ;;  %v2435_v46 = vld [vmem:[#allocation2 + $0x70] sm:$0xff] }
  0x73   : > { %1647 = vmatmul.mubr.bf16.gmra.mrb[12].mxu0 %v1555_v47 }
 0x12e   : > { %v1636_v50 = vpop.f32.mrb[0].mxu0 }
 0x12f   : > { %v2238_v51 = vadd.f32 %v1636_v50, %v1547_v49  ;;  %v581_v52 = vpop.f32.mrb[1].mxu0 }
 0x130   : > { %v2240_v53 = vadd.f32 %v1547_v49, %v581_v52  ;;  %v1637_v54 = vpop.f32.mrb[2].mxu0  ;;  %v2351_v52 = vld [vmem:[#allocation2 + $0x30] sm:$0xff] }
 0x131   : > { %664 = vmax.xlane.f32.xlu1 %v2238_v51  ;;  %v584_v55 = vpop.f32.mrb[3].mxu0  ;;  %v2244_v56 = vadd.f32 %v1637_v54, %v1547_v49  ;;  %v1006_v54 = vld [vmem:[%s2643_s2 + $0x50] sm:$0xff] }
 0x132   : > { %660 = vmax.xlane.f32.xlu0 %v2240_v53  ;;  %v2246_v57 = vadd.f32 %v1547_v49, %v584_v55  ;;  %v1007_v55 = vld [vmem:[%s2643_s2 + $0x58] sm:$0xff] }
 0x135   : > { %666 = vmax.xlane.f32.xlu1 %v2244_v56 }
 0x136   : > { %v1640_v58 = vpop.f32.mrb[4].mxu0  ;;  %662 = vmax.xlane.f32.xlu0 %v2246_v57 }
 0x137   : > { %v597_v59 = vpop.f32.mrb[5].mxu0  ;;  %v2255_v0 = vadd.f32 %v1640_v58, %v1547_v49 }
 0x138   : > { %v2250_v60 = vadd.f32 %v1547_v49, %v597_v59  ;;  %v1641_v61 = vpop.f32.mrb[6].mxu0  ;;  %v1726_v59 = vpack.c.bf16 %v1007_v55, %v1006_v54  ;;  %v2445_v54 = vld [vmem:[#allocation2 + $0x78] sm:$0xff] }
 0x139   : > { %v600_v62 = vpop.f32.mrb[7].mxu0  ;;  %v2258_v1 = vadd.f32 %v1641_v61, %v1547_v49 }
 0x13a   : > { %v2252_v63 = vadd.f32 %v1547_v49, %v600_v62  ;;  %668 = vmax.xlane.f32.xlu0 %v2250_v60  ;;  %v2364_v62 = vld [vmem:[#allocation2 + $0x38] sm:$0xff]  ;;  %1727 = vmatprep.subr.bf16.mxu1 %v1726_v59 }
 0x13b   : > { %1729 = vmatpush3.bf16.msra.mxu1 %v1726_v59 }
 0x13c   : > { %670 = vmax.xlane.f32.xlu1 %v2252_v63 }
 0x13e   : > { %v1644_v2 = vpop.f32.mrb[8].mxu0  ;;  %672 = vmax.xlane.f32.xlu0 %v2255_v0 }
 0x13f   : > { %v613_v3 = vpop.f32.mrb[9].mxu0  ;;  %v2264_v8 = vadd.f32 %v1644_v2, %v1547_v49 }
 0x140   : > { %v2261_v4 = vadd.f32 %v1547_v49, %v613_v3  ;;  %v1645_v5 = vpop.f32.mrb[10].mxu0  ;;  %674 = vmax.xlane.f32.xlu1 %v2258_v1 }
 0x141   : > { %v616_v7 = vpop.f32.mrb[11].mxu0  ;;  %v2269_v10 = vadd.f32 %v1645_v5, %v1547_v49  ;;  %v2371_v5 = vld [vmem:[#allocation2 + $0x40] sm:$0xff] }
 0x142   : > { %v2266_v9 = vadd.f32 %v1547_v49, %v616_v7  ;;  %676 = vmax.xlane.f32.xlu0 %v2261_v4  ;;  %v1009_v7 = vld [vmem:[%s2643_s2 + $0x68] sm:$0xff] }
 0x144   : > { %678 = vmax.xlane.f32.xlu1 %v2266_v9 }
 0x146   : > { %v1648_v11 = vpop.f32.mrb[12].mxu0  ;;  %680 = vmax.xlane.f32.xlu0 %v2264_v8 }
 0x147   : > { %v629_v12 = vpop.f32.mrb[13].mxu0  ;;  %v2276_v16 = vadd.f32 %v1648_v11, %v1547_v49 }
 0x148   : > { %v2273_v13 = vadd.f32 %v1547_v49, %v629_v12  ;;  %v1649_v14 = vpop.f32.mrb[14].mxu0  ;;  %682 = vmax.xlane.f32.xlu1 %v2269_v10  ;;  %v2385_v12 = vld [vmem:[#allocation2 + $0x48] sm:$0xff] }
 0x149   : > { %v632_v15 = vpop.f32.mrb[15].mxu0  ;;  %v2281_v18 = vadd.f32 %v1649_v14, %v1547_v49 }
 0x14a   : > { %v2278_v17 = vadd.f32 %v1547_v49, %v632_v15  ;;  %684 = vmax.xlane.f32.xlu0 %v2273_v13  ;;  %v1730_v15 = vpack.c.bf16 %v1009_v7, %v1008_v6 }
 0x14c   : > { %686 = vmax.xlane.f32.xlu1 %v2278_v17  ;;  %1731 = vmatprep.subr.bf16.mxu1 %v1730_v15 }
 0x14d   : > { %1733 = vmatpush3.bf16.msra.mxu1 %v1730_v15 }
 0x14e   : > { %688 = vmax.xlane.f32.xlu0 %v2276_v16 }
 0x150   : > { %690 = vmax.xlane.f32.xlu1 %v2281_v18 }
 0x1be   : > { %v665_v30 = vpop.xlane.xlu1 %664 }
 0x1bf   : > { %v2309_v31 = vmax.f32 %v2304_v28, %v665_v30  ;;  %v661_v32 = vpop.xlane.xlu0 %660  ;;  %v1734_v30 = vpack.c.bf16 %v1011_v24, %v1010_v23 }
 0x1c0   : > { %v2312_v33 = vmax.f32 %v2306_v29, %v661_v32 }
 0x1c1   : > { %1193 = vst.msk [vmem:[#allocation2 + $0x10] sm:$0xff] %vm362_vm0, %v2309_v31  ;;  %768 = vperm.xlu1 %1807, %v2309_v31   ;;  %1735 = vmatprep.subr.bf16.mxu1 %v1734_v30 }
 0x1c2   : > { %1191 = vst.msk [vmem:[#allocation2] sm:$0xff] %vm362_vm0, %v2312_v33  ;;  %v667_v38 = vpop.xlane.xlu1 %666  ;;  %758 = vperm.xlu0 %1806, %v2312_v33   ;;  %1737 = vmatpush3.bf16.msra.mxu1 %v1734_v30 }
 0x1c3   : > { %v2331_v40 = vmax.f32 %v2314_v34, %v667_v38  ;;  %v663_v41 = vpop.xlane.xlu0 %662  ;;  %v2417_v38 = vld [vmem:[#allocation2 + $0x60] sm:$0xff] }
 0x1c4   : > { %v693_v42 = vmax.f32 %v2319_v35, %v663_v41  ;;  %v2425_v41 = vld [vmem:[#allocation2 + $0x68] sm:$0xff] }
 0x1c5   : > { %1194 = vst.msk [vmem:[#allocation2 + $0x18] sm:$0xff] %vm362_vm0, %v2331_v40  ;;  %773 = vperm.xlu1 %1807, %v2331_v40  }
 0x1c6   : > { %1192 = vst.msk [vmem:[#allocation2 + $0x8] sm:$0xff] %vm362_vm0, %v693_v42  ;;  %v709_v20 = vsub.f32 %v2319_v35, %v693_v42  ;;  %v711_v35 = vsub.f32 %v2314_v34, %v2331_v40 }
 0x1c7   : > { %v669_v47 = vpop.xlane.xlu0 %668 }
 0x1c8   : > { %v2349_v49 = vmax.f32 %v2337_v43, %v669_v47  ;;  %v726_v36 = vmul.f32 1.442695, %v709_v20  ;;  %v730_v40 = vmul.f32 1.442695, %v711_v35 }
 0x1c9   : > { %v671_v50 = vpop.xlane.xlu1 %670  ;;  %763 = vperm.xlu1 %1807, %v693_v42  }
 0x1ca   : > { %1195 = vst.msk [vmem:[#allocation2 + $0x20] sm:$0xff] %vm362_vm0, %v2349_v49  ;;  %v2362_v58 = vmax.f32 %v2346_v48, %v671_v50  ;;  %1818 = vpow2.f32 %v726_v36  ;;  %v708_v50 = vsub.f32 %v2306_v29, %v2312_v33 }
 0x1cb   : > { %v673_v61 = vpop.xlane.xlu0 %672  ;;  %1820 = vpow2.f32 %v730_v40 }
 0x1cc   : > { %1196 = vst.msk [vmem:[#allocation2 + $0x28] sm:$0xff] %vm362_vm0, %v2362_v58  ;;  %v2369_v2 = vmax.f32 %v2351_v52, %v673_v61  ;;  %v713_v44 = vsub.f32 %v2346_v48, %v2362_v58  ;;  %v710_v61 = vsub.f32 %v2304_v28, %v2309_v31  ;;  %v724_v6 = vmul.f32 1.442695, %v708_v50 }
 0x1cd   : > { %v675_v3 = vpop.xlane.xlu1 %674  ;;  %v712_v31 = vsub.f32 %v2337_v43, %v2349_v49 }
 0x1ce   : > { %1197 = vst.msk [vmem:[#allocation2 + $0x30] sm:$0xff] %vm362_vm0, %v2369_v2  ;;  %v2382_v11 = vmax.f32 %v2364_v62, %v675_v3  ;;  %788 = vperm.xlu1 %1807, %v2369_v2   ;;  %v734_v29 = vmul.f32 1.442695, %v713_v44 }
 0x1cf   : > { %v677_v14 = vpop.xlane.xlu0 %676 }
 0x1d0   : > { %1198 = vst.msk [vmem:[#allocation2 + $0x38] sm:$0xff] %vm362_vm0, %v2382_v11  ;;  %v2390_v19 = vmax.f32 %v2371_v5, %v677_v14  ;;  %v715_v33 = vsub.f32 %v2364_v62, %v2382_v11  ;;  %1822 = vpow2.f32 %v734_v29 }
 0x1d1   : > { %v679_v21 = vpop.xlane.xlu1 %678  ;;  %1824 = vpow2.f32 %v724_v6 }
 0x1d2   : > { %v2402_v25 = vmax.f32 %v2385_v12, %v679_v21  ;;  %778 = vperm.xlu1 %1807, %v2349_v49   ;;  %1199 = vst.msk [vmem:[#allocation2 + $0x40] sm:$0xff] %vm362_vm0, %v2390_v19  ;;  %v738_v62 = vmul.f32 1.442695, %v715_v33  ;;  %v732_v21 = vmul.f32 1.442695, %v712_v31  ;;  %v716_v24 = vsub.f32 %v2371_v5, %v2390_v19 }
 0x1d3   : > { %v681_v27 = vpop.xlane.xlu0 %680 }
 0x1d4   : > { %1200 = vst.msk [vmem:[#allocation2 + $0x48] sm:$0xff] %vm362_vm0, %v2402_v25  ;;  %803 = vperm.xlu0 %1806, %v2402_v25   ;;  %v2413_v32 = vmax.f32 %v2393_v22, %v681_v27  ;;  %v717_v7 = vsub.f32 %v2385_v12, %v2402_v25  ;;  %v1819_v28 = vpop.eup %1818  ;;  %1826 = vpow2.f32 %v738_v62  ;;  %v714_v12 = vsub.f32 %v2351_v52, %v2369_v2 }
 0x1d5   : > { %v683_v37 = vpop.xlane.xlu1 %682  ;;  %v1821_v20 = vpop.eup %1820  ;;  %v740_v27 = vmul.f32 1.442695, %v716_v24 }
 0x1d6   : > { %v2420_v39 = vmax.f32 %v2407_v26, %v683_v37  ;;  %783 = vperm.xlu1 %1807, %v2362_v58   ;;  %1201 = vst.msk [vmem:[#allocation2 + $0x50] sm:$0xff] %vm362_vm0, %v2413_v32  ;;  %v2033_v58 = vmov 0.0   ;;  %v742_v14 = vmul.f32 1.442695, %v717_v7  ;;  %v736_v49 = vmul.f32 1.442695, %v714_v12 }
 0x1d7   : > { %v685_v42 = vpop.xlane.xlu0 %684  ;;  %381 = vst.msk [vmem:[#allocation3 + $0x8] sm:$0xff] %vm379_vm1, %v2033_v58  ;;  %380 = vst.msk [vmem:[#allocation3] sm:$0xff] %vm379_vm1, %v2033_v58  ;;  %v718_v36 = vsub.f32 %v2393_v22, %v2413_v32 }
 0x1d8   : > { %1202 = vst.msk [vmem:[#allocation2 + $0x58] sm:$0xff] %vm362_vm0, %v2420_v39  ;;  %813 = vperm.xlu0 %1806, %v2420_v39   ;;  %v2431_v34 = vmax.f32 %v2417_v38, %v685_v42  ;;  %v719_v15 = vsub.f32 %v2407_v26, %v2420_v39 }
 0x1d9   : > { %v687_v45 = vpop.xlane.xlu1 %686  ;;  %382 = vst.msk [vmem:[#allocation3 + $0x10] sm:$0xff] %vm379_vm1, %v2033_v58  ;;  %383 = vst.msk [vmem:[#allocation3 + $0x18] sm:$0xff] %vm379_vm1, %v2033_v58  ;;  %v744_v39 = vmul.f32 1.442695, %v718_v36 }
 0x1da   : > { %v2438_v47 = vmax.f32 %v2425_v41, %v687_v45  ;;  %793 = vperm.xlu1 %1807, %v2382_v11   ;;  %1203 = vst.msk [vmem:[#allocation2 + $0x60] sm:$0xff] %vm362_vm0, %v2431_v34  ;;  %v728_v11 = vmul.f32 1.442695, %v710_v61  ;;  %v746_v43 = vmul.f32 1.442695, %v719_v15  ;;  %v1823_v25 = vpop.eup %1822  ;;  %v720_v37 = vsub.f32 %v2417_v38, %v2431_v34 }
 0x1db   : > { %v689_v55 = vpop.xlane.xlu0 %688  ;;  %384 = vst.msk [vmem:[#allocation3 + $0x20] sm:$0xff] %vm379_vm1, %v2033_v58  ;;  %385 = vst.msk [vmem:[#allocation3 + $0x28] sm:$0xff] %vm379_vm1, %v2033_v58  ;;  %v1825_v2 = vpop.eup %1824 }
 0x1dc   : > { %1204 = vst.msk [vmem:[#allocation2 + $0x68] sm:$0xff] %vm362_vm0, %v2438_v47  ;;  %823 = vperm.xlu0 %1806, %v2438_v47   ;;  %v2451_v48 = vmax.f32 %v2435_v46, %v689_v55  ;;  %1828 = vpow2.f32 %v728_v11  ;;  %v721_v23 = vsub.f32 %v2425_v41, %v2438_v47  ;;  %v748_v42 = vmul.f32 1.442695, %v720_v37 }
 0x1dd   : > { %386 = vst.msk [vmem:[#allocation3 + $0x30] sm:$0xff] %vm379_vm1, %v2033_v58  ;;  %387 = vst.msk [vmem:[#allocation3 + $0x38] sm:$0xff] %vm379_vm1, %v2033_v58  ;;  %v691_v59 = vpop.xlane.xlu1 %690  ;;  %1830 = vpow2.f32 %v742_v14 }
 0x1de   : > { %388 = vst.msk [vmem:[#allocation3 + $0x40] sm:$0xff] %vm379_vm1, %v2033_v58  ;;  %389 = vst.msk [vmem:[#allocation3 + $0x48] sm:$0xff] %vm379_vm1, %v2033_v58  ;;  %v707_v3 = vmax.f32 %v2445_v54, %v691_v59  ;;  %798 = vperm.xlu1 %1807, %v2390_v19   ;;  %1832 = vpow2.f32 %v732_v21  ;;  %v750_v26 = vmul.f32 1.442695, %v721_v23  ;;  %v1827_v30 = vpop.eup %1826  ;;  %v722_v44 = vsub.f32 %v2435_v46, %v2451_v48 }
 0x1df   : > { %390 = vst.msk [vmem:[#allocation3 + $0x50] sm:$0xff] %vm379_vm1, %v2033_v58  ;;  %391 = vst.msk [vmem:[#allocation3 + $0x58] sm:$0xff] %vm379_vm1, %v2033_v58  ;;  %1834 = vpow2.f32 %v746_v43 }
 0x1e0   : > { %392 = vst.msk [vmem:[#allocation3 + $0x60] sm:$0xff] %vm379_vm1, %v2033_v58  ;;  %393 = vst.msk [vmem:[#allocation3 + $0x68] sm:$0xff] %vm379_vm1, %v2033_v58  ;;  %833 = vperm.xlu0 %1806, %v707_v3   ;;  %v723_v52 = vsub.f32 %v2445_v54, %v707_v3  ;;  %1836 = vpow2.f32 %v736_v49  ;;  %v752_v45 = vmul.f32 1.442695, %v722_v44 }
 0x1e1   : > { %394 = vst.msk [vmem:[#allocation3 + $0x70] sm:$0xff] %vm379_vm1, %v2033_v58  ;;  %395 = vst.msk [vmem:[#allocation3 + $0x78] sm:$0xff] %vm379_vm1, %v2033_v58  ;;  %1838 = vpow2.f32 %v750_v26 }
 0x1e2   : > { %1205 = vst.msk [vmem:[#allocation2 + $0x70] sm:$0xff] %vm362_vm0, %v2451_v48  ;;  %1206 = vst.msk [vmem:[#allocation2 + $0x78] sm:$0xff] %vm362_vm0, %v707_v3  ;;  %808 = vperm.xlu1 %1807, %v2413_v32   ;;  %v754_v35 = vmul.f32 1.442695, %v723_v52  ;;  %1840 = vpow2.f32 %v740_v27 }
 0x1e4   : > { %907 = vperm.xlu0 %1806, %v1819_v28   ;;  %1842 = vpow2.f32 %v754_v35 }
 0x1e5   : > { %1844 = vpow2.f32 %v744_v39 }
 0x1e6   : > { %818 = vperm.xlu1 %1807, %v2431_v34   ;;  %v1829_v5 = vpop.eup %1828  ;;  %1846 = vpow2.f32 %v748_v42 }
 0x1e7   : > { %v1831_v19 = vpop.eup %1830  ;;  %1848 = vpow2.f32 %v752_v45 }
 0x1e8   : > { %917 = vperm.xlu0 %1806, %v1821_v20   ;;  %v1833_v41 = vpop.eup %1832 }
 0x1e9   : > { %v1835_v40 = vpop.eup %1834 }
 0x1ea   : > { %828 = vperm.xlu1 %1807, %v2451_v48   ;;  %v1837_v22 = vpop.eup %1836 }
 0x1eb   : > { %v1839_v32 = vpop.eup %1838 }
 0x1ec   : > { %927 = vperm.xlu0 %1806, %v1823_v25   ;;  %v1841_v38 = vpop.eup %1840 }
 0x1ee   : > { %902 = vperm.xlu1 %1807, %v1825_v2   ;;  %v1843_v34 = vpop.eup %1842 }
 0x1ef   : > { %v1845_v47 = vpop.eup %1844 }
 0x1f0   : > { %937 = vperm.xlu0 %1806, %v1827_v30   ;;  %v1847_v50 = vpop.eup %1846 }
 0x1f1   : > { %v1849_v54 = vpop.eup %1848 }
 0x1f2   : > { %912 = vperm.xlu1 %1807, %v1829_v5  }
 0x1f4   : > { %947 = vperm.xlu0 %1806, %v1831_v19  }
 0x1f6   : > { %922 = vperm.xlu1 %1807, %v1833_v41  }
 0x1f8   : > { %957 = vperm.xlu0 %1806, %v1835_v40  }
 0x1fa   : > { %932 = vperm.xlu1 %1807, %v1837_v22  }
 0x1fc   : > { %967 = vperm.xlu0 %1806, %v1839_v32  }
 0x1fe   : > { %942 = vperm.xlu1 %1807, %v1841_v38  }
 0x200   : > { %977 = vperm.xlu0 %1806, %v1843_v34  }
 0x202   : > { %952 = vperm.xlu1 %1807, %v1845_v47  }
 0x206   : > { %962 = vperm.xlu1 %1807, %v1847_v50  }
 0x20a   : > { %972 = vperm.xlu1 %1807, %v1849_v54  }
 0x240   : > { %v769_v55 = vpop.permute.xlu1 %768 }
 0x241   : > { %v759_v46 = vpop.permute.xlu0 %758  ;;  %v838_v33 = vsub.f32 %v2238_v51, %v769_v55 }
 0x242   : > { %v836_v48 = vsub.f32 %v2240_v53, %v759_v46 }
 0x243   : > { %v856_v6 = vmul.f32 1.442695, %v838_v33  ;;  %v885_v33 = vld [vmem:[#allocation3 + $0x8] sm:$0xff] }
 0x244   : > { %v852_v58 = vmul.f32 1.442695, %v836_v48  ;;  %v774_v29 = vpop.permute.xlu1 %773 }
 0x245   : > { %v839_v61 = vsub.f32 %v2244_v56, %v774_v29 }
 0x246   : > { %1850 = vpow2.f32 %v852_v58 }
 0x247   : > { %v858_v62 = vmul.f32 1.442695, %v839_v61 }
 0x248   : > { %v764_v59 = vpop.permute.xlu1 %763 }
 0x249   : > { %v837_v3 = vsub.f32 %v2246_v57, %v764_v59  ;;  %v884_v59 = vld [vmem:[#allocation3] sm:$0xff] }
 0x24b   : > { %v854_v7 = vmul.f32 1.442695, %v837_v3  ;;  %v887_v3 = vld [vmem:[#allocation3 + $0x18] sm:$0xff] }
 0x24d   : > { %1852 = vpow2.f32 %v854_v7  ;;  %v789_v11 = vpop.permute.xlu1 %788 }
 0x24e   : > { %1854 = vpow2.f32 %v856_v6  ;;  %v842_v51 = vsub.f32 %v2255_v0, %v789_v11  ;;  %v886_v11 = vld [vmem:[#allocation3 + $0x10] sm:$0xff] }
 0x24f   : > { %1856 = vpow2.f32 %v858_v62 }
 0x250   : > { %v1851_v28 = vpop.eup %1850  ;;  %v864_v20 = vmul.f32 1.442695, %v842_v51 }
 0x251   : > { %v779_v31 = vpop.permute.xlu1 %778  ;;  %1682 = vmatprep.mubr.f32.mxu1 %v1851_v28 }
 0x252   : > { %v840_v53 = vsub.f32 %v2250_v60, %v779_v31 }
 0x253   : > { %v804_v14 = vpop.permute.xlu0 %803 }
 0x254   : > { %v860_v15 = vmul.f32 1.442695, %v840_v53  ;;  %v845_v0 = vsub.f32 %v2266_v9, %v804_v14 }
 0x255   : > { %v784_v12 = vpop.permute.xlu1 %783 }
 0x256   : > { %1858 = vpow2.f32 %v860_v15  ;;  %v841_v56 = vsub.f32 %v2252_v63, %v784_v12  ;;  %v870_v2 = vmul.f32 1.442695, %v845_v0 }
 0x257   : > { %v1853_v57 = vpop.eup %1852  ;;  %v814_v43 = vpop.permute.xlu0 %813 }
 0x258   : > { %v1855_v21 = vpop.eup %1854  ;;  %v862_v23 = vmul.f32 1.442695, %v841_v56  ;;  %1683 = vmatmul.mubr.f32.vlgmr.msra.gmra.mrb[0].mxu1 %v1853_v57  ;;  %v847_v27 = vsub.f32 %v2269_v10, %v814_v43  ;;  %v889_v43 = vld [vmem:[#allocation3 + $0x28] sm:$0xff] }
 0x259   : > { %v794_v49 = vpop.permute.xlu1 %793  ;;  %1685 = vmatprep.mubr.f32.mxu1 %v1855_v21  ;;  %v1857_v60 = vpop.eup %1856 }
 0x25a   : > { %1860 = vpow2.f32 %v862_v23  ;;  %v843_v24 = vsub.f32 %v2258_v1, %v794_v49  ;;  %v874_v5 = vmul.f32 1.442695, %v847_v27  ;;  %v888_v49 = vld [vmem:[#allocation3 + $0x20] sm:$0xff]  ;;  %v890_v27 = vld [vmem:[#allocation3 + $0x30] sm:$0xff] }
 0x25b   : > { %1862 = vpow2.f32 %v864_v20  ;;  %v824_v63 = vpop.permute.xlu0 %823 }
 0x25c   : > { %v866_v25 = vmul.f32 1.442695, %v843_v24  ;;  %1686 = vmatmul.mubr.f32.gmra.mrb[2].mxu1 %v1857_v60  ;;  %v849_v9 = vsub.f32 %v2278_v17, %v824_v63 }
 0x25d   : > { %v799_v26 = vpop.permute.xlu1 %798 }
 0x25e   : > { %1864 = vpow2.f32 %v866_v25  ;;  %v844_v52 = vsub.f32 %v2261_v4, %v799_v26  ;;  %v878_v10 = vmul.f32 1.442695, %v849_v9  ;;  %v891_v26 = vld [vmem:[#allocation3 + $0x38] sm:$0xff] }
 0x25f   : > { %v834_v37 = vpop.permute.xlu0 %833 }
 0x260   : > { %v1859_v30 = vpop.eup %1858  ;;  %v868_v35 = vmul.f32 1.442695, %v844_v52  ;;  %v851_v40 = vsub.f32 %v2281_v18, %v834_v37 }
 0x261   : > { %v809_v36 = vpop.permute.xlu1 %808  ;;  %1688 = vmatprep.mubr.f32.mxu1 %v1859_v30 }
 0x262   : > { %1866 = vpow2.f32 %v868_v35  ;;  %v846_v1 = vsub.f32 %v2264_v8, %v809_v36  ;;  %v882_v32 = vmul.f32 1.442695, %v851_v40 }
 0x263   : > { %1868 = vpow2.f32 %v870_v2  ;;  %v908_v46 = vpop.permute.xlu0 %907 }
 0x264   : > { %v1861_v19 = vpop.eup %1860  ;;  %v872_v39 = vmul.f32 1.442695, %v846_v1  ;;  %v981_v61 = vmul.f32 %v908_v46, %v885_v33 }
 0x265   : > { %v1863_v41 = vpop.eup %1862  ;;  %v819_v42 = vpop.permute.xlu1 %818  ;;  %1689 = vmatmul.mubr.f32.gmra.mrb[4].mxu1 %v1861_v19 }
 0x266   : > { %1870 = vpow2.f32 %v872_v39  ;;  %v848_v4 = vsub.f32 %v2273_v13, %v819_v42  ;;  %1691 = vmatprep.mubr.f32.mxu1 %v1863_v41  ;;  %v893_v39 = vld [vmem:[#allocation3 + $0x48] sm:$0xff] }
 0x267   : > { %1872 = vpow2.f32 %v874_v5  ;;  %v918_v58 = vpop.permute.xlu0 %917 }
 0x268   : > { %v1865_v44 = vpop.eup %1864  ;;  %v876_v8 = vmul.f32 1.442695, %v848_v4  ;;  %v983_v14 = vmul.f32 %v918_v58, %v887_v3  ;;  %v897_v58 = vld [vmem:[#allocation3 + $0x68] sm:$0xff] }
 0x269   : > { %v829_v22 = vpop.permute.xlu1 %828  ;;  %1692 = vmatmul.mubr.f32.gmra.mrb[6].mxu1 %v1865_v44 }
 0x26a   : > { %1874 = vpow2.f32 %v876_v8  ;;  %v850_v17 = vsub.f32 %v2276_v16, %v829_v22  ;;  %v2034_v16 = vmov 2  }
 0x26b   : > { %1876 = vpow2.f32 %v878_v10  ;;  %1808 = vset.pattern.permute.xlu0 %v2034_v16  ;;  %1809 = vset.pattern.permute.xlu1 %v2034_v16  ;;  %v928_v6 = vpop.permute.xlu0 %927  ;;  %v892_v10 = vld [vmem:[#allocation3 + $0x40] sm:$0xff] }
 0x26c   : > { %v1867_v45 = vpop.eup %1866  ;;  %v880_v38 = vmul.f32 1.442695, %v850_v17  ;;  %v985_v0 = vmul.f32 %v928_v6, %v889_v43 }
 0x26d   : > { %v1869_v34 = vpop.eup %1868  ;;  %1694 = vmatprep.mubr.f32.mxu1 %v1867_v45  ;;  %v903_v48 = vpop.permute.xlu1 %902 }
 0x26e   : > { %1878 = vpow2.f32 %v880_v38  ;;  %1695 = vmatmul.mubr.f32.gmra.mrb[8].mxu1 %v1869_v34  ;;  %v980_v7 = vmul.f32 %v903_v48, %v884_v59  ;;  %v894_v34 = vld [vmem:[#allocation3 + $0x50] sm:$0xff]  ;;  %v896_v59 = vld [vmem:[#allocation3 + $0x60] sm:$0xff] }
 0x26f   : > { %1880 = vpow2.f32 %v882_v32  ;;  %v938_v20 = vpop.permute.xlu0 %937  ;;  %v895_v32 = vld [vmem:[#allocation3 + $0x58] sm:$0xff] }
 0x270   : > { %v1871_v13 = vpop.eup %1870  ;;  %v987_v5 = vmul.f32 %v938_v20, %v891_v26 }
 0x271   : > { %v1873_v47 = vpop.eup %1872  ;;  %1697 = vmatprep.mubr.f32.mxu1 %v1871_v13  ;;  %v913_v29 = vpop.permute.xlu1 %912 }
 0x272   : > { %1698 = vmatmul.mubr.f32.gmra.mrb[10].mxu1 %v1873_v47  ;;  %v982_v15 = vmul.f32 %v913_v29, %v886_v11 }
 0x273   : > { %v948_v25 = vpop.permute.xlu0 %947 }
 0x274   : > { %v1875_v18 = vpop.eup %1874  ;;  %v989_v22 = vmul.f32 %v948_v25, %v893_v39 }
 0x275   : > { %v1877_v50 = vpop.eup %1876  ;;  %1700 = vmatprep.mubr.f32.mxu1 %v1875_v18  ;;  %v923_v28 = vpop.permute.xlu1 %922 }
 0x276   : > { %1701 = vmatmul.mubr.f32.gmra.mrb[12].mxu1 %v1877_v50  ;;  %v984_v63 = vmul.f32 %v923_v28, %v888_v49 }
 0x277   : > { %v958_v41 = vpop.permute.xlu0 %957 }
 0x278   : > { %v1879_v54 = vpop.eup %1878  ;;  %v991_v16 = vmul.f32 %v958_v41, %v895_v32 }
 0x279   : > { %v1881_v55 = vpop.eup %1880  ;;  %1703 = vmatprep.mubr.f32.mxu1 %v1879_v54  ;;  %v933_v23 = vpop.permute.xlu1 %932 }
 0x27a   : > { %1704 = vmatmul.mubr.f32.gmra.mrb[14].mxu1 %v1881_v55  ;;  %v986_v9 = vmul.f32 %v933_v23, %v890_v27 }
 0x27b   : > { %v968_v50 = vpop.permute.xlu0 %967 }
 0x27c   : > { %v993_v11 = vmul.f32 %v968_v50, %v897_v58 }
 0x27d   : > { %v943_v52 = vpop.permute.xlu1 %942 }
 0x27e   : > { %v988_v45 = vmul.f32 %v943_v52, %v892_v10 }
 0x281   : > { %v953_v40 = vpop.permute.xlu1 %952 }
 0x282   : > { %v990_v29 = vmul.f32 %v953_v40, %v894_v34 }
 0x285   : > { %v963_v46 = vpop.permute.xlu1 %962 }
 0x32b   : > { %v1684_v62 = vpop.f32.mrb[0].mxu1 }
 0x32c   : > { %v1158_v31 = vadd.f32 %v1684_v62, %v981_v61  ;;  %v1078_v53 = vpop.f32.mrb[1].mxu1 }
 0x32d   : > { %v1157_v51 = vadd.f32 %v1078_v53, %v980_v7  ;;  %v978_v53 = vpop.permute.xlu0 %977 }
 0x32e   : > { %1175 = vst.msk [vmem:[#allocation3 + $0x8] sm:$0xff] %vm379_vm1, %v1158_v31  ;;  %v899_v31 = vld [vmem:[#allocation3 + $0x78] sm:$0xff] }
 0x32f   : > { %1174 = vst.msk [vmem:[#allocation3] sm:$0xff] %vm379_vm1, %v1157_v51  ;;  %v1687_v12 = vpop.f32.mrb[2].mxu1  ;;  %v992_v51 = vmul.f32 %v963_v46, %v896_v59  ;;  %v995_v23 = vmul.f32 %v978_v53, %v899_v31 }
 0x330   : > { %v1160_v56 = vadd.f32 %v1687_v12, %v983_v14  ;;  %v1088_v57 = vpop.f32.mrb[3].mxu1  ;;  %v973_v12 = vpop.permute.xlu1 %972 }
 0x331   : > { %v1159_v21 = vadd.f32 %v1088_v57, %v982_v15  ;;  %v898_v15 = vld [vmem:[#allocation3 + $0x70] sm:$0xff] }
 0x332   : > { %1177 = vst.msk [vmem:[#allocation3 + $0x18] sm:$0xff] %vm379_vm1, %v1160_v56 }
 0x333   : > { %1176 = vst.msk [vmem:[#allocation3 + $0x10] sm:$0xff] %vm379_vm1, %v1159_v21 }
 0x335   : > { %v2520_v24 = vld [vmem:[#allocation3 + $0x8] sm:$0xff] }
 0x336   : > { %1882 = vrcp.f32 %v2520_v24  ;;  %v2523_v60 = vld [vmem:[#allocation3] sm:$0xff] }
 0x337   : > { %1884 = vrcp.f32 %v2523_v60 }
 0x338   : > { %v1690_v2 = vpop.f32.mrb[4].mxu1 }
 0x339   : > { %v1162_v30 = vadd.f32 %v1690_v2, %v985_v0  ;;  %v1098_v35 = vpop.f32.mrb[5].mxu1  ;;  %v2531_v37 = vld [vmem:[#allocation3 + $0x18] sm:$0xff]  ;;  %v994_v0 = vmul.f32 %v973_v12, %v898_v15 }
 0x33a   : > { %v1161_v36 = vadd.f32 %v1098_v35, %v984_v63  ;;  %v2526_v1 = vld [vmem:[#allocation3 + $0x10] sm:$0xff] }
 0x33b   : > { %1179 = vst.msk [vmem:[#allocation3 + $0x28] sm:$0xff] %vm379_vm1, %v1162_v30  ;;  %1886 = vrcp.f32 %v2526_v1 }
 0x33c   : > { %1178 = vst.msk [vmem:[#allocation3 + $0x20] sm:$0xff] %vm379_vm1, %v1161_v36  ;;  %v1693_v19 = vpop.f32.mrb[6].mxu1  ;;  %1888 = vrcp.f32 %v2531_v37 }
 0x33d   : > { %v1164_v42 = vadd.f32 %v1693_v19, %v987_v5  ;;  %v1108_v4 = vpop.f32.mrb[7].mxu1 }
 0x33e   : > { %v1163_v44 = vadd.f32 %v1108_v4, %v986_v9 }
 0x33f   : > { %1181 = vst.msk [vmem:[#allocation3 + $0x38] sm:$0xff] %vm379_vm1, %v1164_v42 }
 0x340   : > { %v1883_v8 = vpop.eup %1882  ;;  %1180 = vst.msk [vmem:[#allocation3 + $0x30] sm:$0xff] %vm379_vm1, %v1163_v44 }
 0x341   : > { %v1885_v17 = vpop.eup %1884  ;;  %v1696_v38 = vpop.f32.mrb[8].mxu1  ;;  %1249 = vperm.xlu0 %1808, %v1883_v8  }
 0x342   : > { %v1166_v13 = vadd.f32 %v1696_v38, %v989_v22  ;;  %v1118_v47 = vpop.f32.mrb[9].mxu1  ;;  %1244 = vperm.xlu1 %1809, %v1885_v17   ;;  %v2536_v18 = vld [vmem:[#allocation3 + $0x28] sm:$0xff] }
 0x343   : > { %v1165_v54 = vadd.f32 %v1118_v47, %v988_v45  ;;  %1890 = vrcp.f32 %v2536_v18  ;;  %v2539_v55 = vld [vmem:[#allocation3 + $0x20] sm:$0xff] }
 0x344   : > { %1183 = vst.msk [vmem:[#allocation3 + $0x48] sm:$0xff] %vm379_vm1, %v1166_v13  ;;  %1892 = vrcp.f32 %v2539_v55 }
 0x345   : > { %v1887_v48 = vpop.eup %1886  ;;  %1182 = vst.msk [vmem:[#allocation3 + $0x40] sm:$0xff] %vm379_vm1, %v1165_v54  ;;  %v1699_v33 = vpop.f32.mrb[10].mxu1 }
 0x346   : > { %v1168_v61 = vadd.f32 %v1699_v33, %v991_v16  ;;  %v1128_v3 = vpop.f32.mrb[11].mxu1  ;;  %1254 = vperm.xlu1 %1809, %v1887_v48   ;;  %v2544_v6 = vld [vmem:[#allocation3 + $0x38] sm:$0xff]  ;;  %v1889_v28 = vpop.eup %1888 }
 0x347   : > { %v1167_v7 = vadd.f32 %v1128_v3, %v990_v29  ;;  %1894 = vrcp.f32 %v2544_v6  ;;  %v2547_v62 = vld [vmem:[#allocation3 + $0x30] sm:$0xff] }
 0x348   : > { %1185 = vst.msk [vmem:[#allocation3 + $0x58] sm:$0xff] %vm379_vm1, %v1168_v61  ;;  %1896 = vrcp.f32 %v2547_v62 }
 0x349   : > { %1184 = vst.msk [vmem:[#allocation3 + $0x50] sm:$0xff] %vm379_vm1, %v1167_v7  ;;  %v1702_v14 = vpop.f32.mrb[12].mxu1 }
 0x34a   : > { %v1170_v56 = vadd.f32 %v1702_v14, %v993_v11  ;;  %v1138_v57 = vpop.f32.mrb[13].mxu1  ;;  %1259 = vperm.xlu1 %1809, %v1889_v28   ;;  %v1370_v14 = vld [vmem:[%s2645_s4] sm:$0x3] }
 0x34b   : > { %v1169_v20 = vadd.f32 %v1138_v57, %v992_v51  ;;  %v2552_v21 = vld [vmem:[#allocation3 + $0x48] sm:$0xff] }
 0x34c   : > { %1187 = vst.msk [vmem:[#allocation3 + $0x68] sm:$0xff] %vm379_vm1, %v1170_v56  ;;  %1898 = vrcp.f32 %v2552_v21  ;;  %v2556_v43 = vld [vmem:[#allocation3 + $0x40] sm:$0xff] }
 0x34d   : > { %v1891_v49 = vpop.eup %1890  ;;  %1186 = vst.msk [vmem:[#allocation3 + $0x60] sm:$0xff] %vm379_vm1, %v1169_v20  ;;  %v1705_v25 = vpop.f32.mrb[14].mxu1  ;;  %1900 = vrcp.f32 %v2556_v43 }
 0x34e   : > { %v1893_v26 = vpop.eup %1892  ;;  %v1172_v63 = vadd.f32 %v1705_v25, %v995_v23  ;;  %v1148_v52 = vpop.f32.mrb[15].mxu1  ;;  %1269 = vperm.xlu1 %1809, %v1891_v49  }
 0x34f   : > { %v1171_v2 = vadd.f32 %v1148_v52, %v994_v0  ;;  %1264 = vperm.xlu0 %1808, %v1893_v26   ;;  %v2560_v27 = vld [vmem:[#allocation3 + $0x58] sm:$0xff] }
 0x350   : > { %1189 = vst.msk [vmem:[#allocation3 + $0x78] sm:$0xff] %vm379_vm1, %v1172_v63  ;;  %1902 = vrcp.f32 %v2560_v27  ;;  %v1220_v30 = vld [vmem:[#allocation3 + $0x50] sm:$0xff] }
 0x351   : > { %v1895_v35 = vpop.eup %1894  ;;  %1188 = vst.msk [vmem:[#allocation3 + $0x70] sm:$0xff] %vm379_vm1, %v1171_v2  ;;  %1904 = vrcp.f32 %v1220_v30 }
 0x352   : > { %v1897_v36 = vpop.eup %1896  ;;  %1279 = vperm.xlu1 %1809, %v1895_v35  }
 0x353   : > { %1274 = vperm.xlu0 %1808, %v1897_v36   ;;  %v2565_v5 = vld [vmem:[#allocation3 + $0x68] sm:$0xff] }
 0x354   : > { %1906 = vrcp.f32 %v2565_v5  ;;  %v1222_v9 = vld [vmem:[#allocation3 + $0x60] sm:$0xff] }
 0x355   : > { %1908 = vrcp.f32 %v1222_v9 }
 0x356   : > { %v1899_v19 = vpop.eup %1898 }
 0x357   : > { %v1901_v39 = vpop.eup %1900  ;;  %1289 = vperm.xlu1 %1809, %v1899_v19   ;;  %v2568_v41 = vld [vmem:[#allocation3 + $0x78] sm:$0xff] }
 0x358   : > { %1284 = vperm.xlu0 %1808, %v1901_v39   ;;  %1910 = vrcp.f32 %v2568_v41  ;;  %v1224_v42 = vld [vmem:[#allocation3 + $0x70] sm:$0xff] }
 0x359   : > { %1912 = vrcp.f32 %v1224_v42 }
 0x35a   : > { %v1903_v4 = vpop.eup %1902 }
 0x35b   : > { %v1905_v10 = vpop.eup %1904  ;;  %1299 = vperm.xlu1 %1809, %v1903_v4  }
 0x35c   : > { %1294 = vperm.xlu0 %1808, %v1905_v10  }
 0x35e   : > { %v1907_v40 = vpop.eup %1906 }
 0x35f   : > { %v1909_v44 = vpop.eup %1908  ;;  %1309 = vperm.xlu1 %1809, %v1907_v40  }
 0x360   : > { %1304 = vperm.xlu0 %1808, %v1909_v44  }
 0x362   : > { %v1911_v8 = vpop.eup %1910 }
 0x363   : > { %v1913_v22 = vpop.eup %1912  ;;  %1319 = vperm.xlu1 %1809, %v1911_v8  }
 0x364   : > { %1314 = vperm.xlu0 %1808, %v1913_v22  }
 0x3c0   : > { %v1250_v45 = vpop.permute.xlu0 %1249 }
 0x3c1   : > { %v1245_v17 = vpop.permute.xlu1 %1244  ;;  %v1323_v34 = vmul.f32 %v1250_v45, %v2520_v24 }
 0x3c2   : > { %v1322_v32 = vmul.f32 %v1245_v17, %v2523_v60 }
 0x3c4   : > { %1338 = vxpose.xlu0.b32.start [1/16] (narrow) %v1322_v32, 8 }
 0x3c5   : > { %v1255_v38 = vpop.permute.xlu1 %1254 }
 0x3c6   : > { %v1324_v13 = vmul.f32 %v1255_v38, %v2526_v1 }
 0x3c8   : > { %1339 = vxpose.xlu0.b32.cont [2/16] (narrow) %v1323_v34, 8 }
 0x3c9   : > { %v1260_v47 = vpop.permute.xlu1 %1259 }
 0x3ca   : > { %v1325_v50 = vmul.f32 %v1260_v47, %v2531_v37 }
 0x3cc   : > { %1340 = vxpose.xlu0.b32.cont [3/16] (narrow) %v1324_v13, 8 }
 0x3cd   : > { %v1270_v46 = vpop.permute.xlu1 %1269 }
 0x3ce   : > { %v1265_v54 = vpop.permute.xlu0 %1264  ;;  %v1327_v60 = vmul.f32 %v1270_v46, %v2536_v18 }
 0x3cf   : > { %v1326_v16 = vmul.f32 %v1265_v54, %v2539_v55 }
 0x3d0   : > { %1341 = vxpose.xlu0.b32.cont [4/16] (narrow) %v1325_v50, 8 }
 0x3d1   : > { %v1280_v24 = vpop.permute.xlu1 %1279 }
 0x3d2   : > { %v1275_v48 = vpop.permute.xlu0 %1274  ;;  %v1329_v1 = vmul.f32 %v1280_v24, %v2544_v6 }
 0x3d3   : > { %v1328_v58 = vmul.f32 %v1275_v48, %v2547_v62 }
 0x3d4   : > { %1342 = vxpose.xlu0.b32.cont [5/16] (narrow) %v1326_v16, 8 }
 0x3d6   : > { %v1290_v33 = vpop.permute.xlu1 %1289 }
 0x3d7   : > { %v1285_v29 = vpop.permute.xlu0 %1284  ;;  %v1331_v55 = vmul.f32 %v1290_v33, %v2552_v21 }
 0x3d8   : > { %1343 = vxpose.xlu0.b32.cont [6/16] (narrow) %v1327_v60, 8  ;;  %v1330_v37 = vmul.f32 %v1285_v29, %v2556_v43 }
 0x3da   : > { %v1300_v18 = vpop.permute.xlu1 %1299 }
 0x3db   : > { %v1295_v59 = vpop.permute.xlu0 %1294  ;;  %v1333_v3 = vmul.f32 %v1300_v18, %v2560_v27 }
 0x3dc   : > { %1344 = vxpose.xlu0.b32.cont [7/16] (narrow) %v1328_v58, 8  ;;  %v1332_v61 = vmul.f32 %v1295_v59, %v1220_v30 }
 0x3de   : > { %v1310_v62 = vpop.permute.xlu1 %1309 }
 0x3df   : > { %v1305_v7 = vpop.permute.xlu0 %1304  ;;  %v1335_v11 = vmul.f32 %v1310_v62, %v2565_v5 }
 0x3e0   : > { %1345 = vxpose.xlu0.b32.cont [8/16] (narrow) %v1329_v1, 8  ;;  %v1334_v6 = vmul.f32 %v1305_v7, %v1222_v9 }
 0x3e2   : > { %v1320_v53 = vpop.permute.xlu1 %1319 }
 0x3e3   : > { %v1315_v28 = vpop.permute.xlu0 %1314  ;;  %v1337_v51 = vmul.f32 %v1320_v53, %v2568_v41 }
 0x3e4   : > { %1346 = vxpose.xlu0.b32.cont [9/16] (narrow) %v1330_v37, 8  ;;  %v1336_v31 = vmul.f32 %v1315_v28, %v1224_v42 }
 0x3e8   : > { %1347 = vxpose.xlu0.b32.cont [10/16] (narrow) %v1331_v55, 8 }
 0x3ec   : > { %1348 = vxpose.xlu0.b32.cont [11/16] (narrow) %v1332_v61, 8 }
 0x3f0   : > { %1349 = vxpose.xlu0.b32.cont [12/16] (narrow) %v1333_v3, 8 }
 0x3f4   : > { %1350 = vxpose.xlu0.b32.cont [13/16] (narrow) %v1334_v6, 8 }
 0x3f8   : > { %1351 = vxpose.xlu0.b32.cont [14/16] (narrow) %v1335_v11, 8 }
 0x3fc   : > { %1352 = vxpose.xlu0.b32.cont [15/16] (narrow) %v1336_v31, 8 }
 0x400   : > { %1353 = vxpose.xlu0.b32.end [16/16] (narrow) %v1337_v51, 8 }
 0x444   : > { %v1354_v15 = vpop.trf.xlu0 }
 0x445   : > { %v1371_v12 = vsub.f32 %v1354_v15, %v1370_v14 }
 0x447   : > { %1372 = vst [vmem:[%s332_s16] sm:$0x3] %v1371_v12 }
 0x448   : > { %1957 = shalt.err (!%p1954_p4)
}
 0x449   : > { %s1958_s29 = scalar_lea.hbm %s2592_s9, 32  ;;  %s1962_s10 = scalar_lea.hbm %s2646_s5, 64 }
 0x44a   : > { %p1959_p7 = scmp.ne.s32.totalorder %s2592_s9, %s1958_s29  ;;  %p1963_p1 = scmp.lt.u32.totalorder %s2592_s9, %s2646_s5 }
 0x44b   : > { %p1964_p3 = scmp.lt.u32.totalorder %s1962_s10, %s1958_s29  ;;  %p1966_p8 = scmp.lt.u32.totalorder %s1958_s29, %s2592_s9 }
 0x44c   : > { %p1960_p10 = pnand %p1959_p7, %p2654_p11 }
 0x44d   : > { %p1965_p9 = por %p1964_p3, %p1963_p1 }
 0x44e   : > { %p1961_p12 = pneg %p1960_p10 }
 0x44f   : > { %p1967_p0 = por %p1966_p8, %p1965_p9 }
 0x451   : > { %p1968_p6 = pnand %p1967_p0, %p1961_p12 }
 0x453   : > { %1971 = shalt.err (!%p1968_p6)
}
 0x454   : > { %1740 = dma.vmem_to_hbm [thread:$0]  (%p2654_p11), %s2594_s17, 32, %s2592_s9, %s1374_s12  }
 0x455 PF: > { %s1400_s16 = sand.u32 1, %s2006_s18   ;;  %p2655_p13 = scmp.ne.s32.totalorder %s2651_s8, 0 }
 0x456   : > { %p2656_p2 = scmp.ge.s32.totalorder %s2026_s23, 2  ;;  %s1401_s24 = scalar_lea.sflag [#allocation6], %s1400_s16 }
 0x458   : > { %p1747_p5 = pnand %p2656_p2, %p2655_p13 }
 0x45a   : > { %2001 = dma.done.wait (!%p1747_p5), %s1401_s24, 32  }
 0x45b   : > { %2003 = vsyncadd (!%p1747_p5), %s1401_s24, 4294967264  ;;  %s21_s23 = sadd.s32 1, %s2026_s23   ;;  %s2657_s18 = smov %s2010_s19 }
 0x45c   : > { %p18_p4 = scmp.ge.s32.totalorder %s21_s23, 4   ;;  %s2658_s19 = smov %s2014_s20 }
 0x45d   : > { %s2659_s20 = smov %s2122_s7  ;;  %s2660_s21 = smov %s2022_s22 }
 0x45e   : > { %s2661_s22 = smov %s2663_s26  ;;  %20 = sbr.rel (!%p18_p4) target bundleno = 6 (0x6), region = 105 }
 0x465   :  { %1406 = vsyncpa [#allocation5], 1 }
 0x466   :  { %1408 = vsyncpa [#allocation5 + $0x1], 1 }
 0x467   :  { %1409 = vsyncpa [#allocation6], 1 }
 0x468   :  { %1411 = vsyncpa [#allocation6 + $0x1], 1 }

</bundles_post_ra>
